<compile_context>
chip_gen: v6e
topology: v6e:2x2x1
jax: 0.10.0
libtpu: 0.0.40
codegen_flags: <defaults>
</compile_context>

<pallas_src>
import functools
import math

import jax
import jax.numpy as jnp
from jax.experimental import pallas as pl
from jax.experimental.pallas import tpu as pltpu


LANE = 128
_VMEM_LIMIT = 32 * 1024 * 1024   # fits the v7x 64 MiB part; plenty for our tiles


def _round_up(x: int, m: int) -> int:
    return ((x + m - 1) // m) * m


def _pad_dim(c: int) -> int:
    # Lane-dense padding: 128 minimum; 256-multiples for wide dims so each
    # matmul fills the 2x256x256 MXU on v6e/v7x (128 is native on v5e).
    return _round_up(c, 128) if c <= 128 else _round_up(c, 256)


# ----------------------------------------------------------------------------
# Kernel 1: fused im2col matmul (used for the STRIDED convs: raw-wav, pre_conv)
#   one [t_tile, K*Cin_pad] x [K*Cin_pad, Cout_pad] MXU matmul + bias + tanh
# ----------------------------------------------------------------------------
def _mm_bias_tanh_kernel(x_ref, w_ref, b_ref, o_ref, *, apply_tanh):
    acc = jnp.dot(x_ref[...], w_ref[...], preferred_element_type=jnp.float32)
    acc = acc + b_ref[...]
    if apply_tanh:
        acc = jnp.tanh(acc)
    o_ref[...] = acc.astype(o_ref.dtype)


def conv1d_strided_pallas(x, weight, bias, *, stride, apply_tanh=True,
                          t_tile=256, out_dtype=jnp.bfloat16):
    """Strided 'valid' Conv1d + bias + tanh via im2col + one fused MXU matmul.

    x:      [B, T, Cin]  TRUE channels (no padding requirement).
    weight: [Cout, Cin, K]  (PyTorch Conv1d layout), bias: [Cout].
    Returns [B, T_out, Cout_pad] (bf16), padded output channels exactly zero.
    """
    B, T, cin = x.shape
    cout, cin_w, K = weight.shape
    assert cin_w == cin, (cin_w, cin)
    t_out = (T - K) // stride + 1
    assert t_out >= 1

    # im2col over TRUE channels only; pad the fused (K*Cin) contraction once.
    x = x.astype(jnp.bfloat16)
    last = (t_out - 1) * stride + 1
    taps = [x[:, k: k + last: stride, :] for k in range(K)]
    x_cols = jnp.stack(taps, axis=2).reshape(B, t_out, K * cin)

    kc = K * cin
    kc_pad = _pad_dim(kc)
    cout_pad = _pad_dim(cout)

    t_tile = min(t_tile, _round_up(t_out, 16))
    t_pad = _round_up(t_out, t_tile)
    x_cols = jnp.pad(x_cols, ((0, 0), (0, t_pad - t_out), (0, kc_pad - kc)))

    # weight -> [K*Cin, Cout] (right-multiply form, (k, c) fused order) -> pad.
    w = jnp.transpose(weight, (2, 1, 0)).reshape(kc, cout).astype(jnp.bfloat16)
    w = jnp.pad(w, ((0, kc_pad - kc), (0, cout_pad - cout)))
    b = jnp.pad(bias.astype(jnp.float32), (0, cout_pad - cout)).reshape(1, cout_pad)

    grid = (B, t_pad // t_tile)
    out = pl.pallas_call(
        functools.partial(_mm_bias_tanh_kernel, apply_tanh=apply_tanh),
        out_shape=jax.ShapeDtypeStruct((B, t_pad, cout_pad), out_dtype),
        grid_spec=pltpu.PrefetchScalarGridSpec(
            num_scalar_prefetch=0,
            grid=grid,
            in_specs=[
                pl.BlockSpec((None, t_tile, kc_pad), lambda b_, i: (b_, i, 0)),
                pl.BlockSpec((kc_pad, cout_pad), lambda b_, i: (0, 0)),
                pl.BlockSpec((1, cout_pad), lambda b_, i: (0, 0)),
            ],
            out_specs=pl.BlockSpec((None, t_tile, cout_pad),
                                   lambda b_, i: (b_, i, 0)),
        ),
        compiler_params=pltpu.CompilerParams(
            dimension_semantics=("parallel", "parallel"),
            vmem_limit_bytes=_VMEM_LIMIT,
        ),
    )(x_cols, w, b)
    return out[:, :t_out, :]


# ----------------------------------------------------------------------------
# Kernel 2: stride-1 'same' conv with an in-kernel K-1 halo (no im2col).
#   Reads two adjacent time tiles of the SAME activation array, accumulates K
#   shifted-slice bf16 matmuls (f32 acc), bias + tanh, optionally fuses the
#   kernel-size-1 post_conv (+ bias + tanh) before the single lane-dense store.
# ----------------------------------------------------------------------------
def _same_conv_kernel(*refs, K, t_tile, fused_post):
    if fused_post:
        xa_ref, xb_ref, w_ref, b_ref, w2_ref, b2_ref, o_ref = refs
    else:
        xa_ref, xb_ref, w_ref, b_ref, o_ref = refs
        w2_ref = b2_ref = None

    # (2*t_tile, Cin_pad) window = [tile i ; tile i+1] of the padded activation.
    x_cat = jnp.concatenate([xa_ref[...], xb_ref[...]], axis=0)

    acc = jnp.dot(x_cat[0:t_tile, :], w_ref[0],
                  preferred_element_type=jnp.float32)
    for k in range(1, K):                       # static unroll, K is small
        acc = acc + jnp.dot(x_cat[k:k + t_tile, :], w_ref[k],
                            preferred_element_type=jnp.float32)
    y = jnp.tanh(acc + b_ref[...])

    if fused_post:                              # kernel-size-1 post conv + tanh
        acc2 = jnp.dot(y.astype(jnp.bfloat16), w2_ref[...],
                       preferred_element_type=jnp.float32)
        y = jnp.tanh(acc2 + b2_ref[...])

    o_ref[...] = y.astype(o_ref.dtype)


def conv1d_same_pallas(x, weight, bias, *, post_weight=None, post_bias=None,
                       t_tile=256, out_dtype=jnp.bfloat16):
    """Stride-1 'same' Conv1d + bias + tanh (optionally fused with a K=1 post
    conv + bias + tanh) as a halo'd Pallas kernel.

    x:      [B, T, Cin_pad]  channels already zero-padded to _pad_dim(Cin).
    weight: [Cout, Cin, K] (true, unpadded), bias: [Cout].
    post_weight: [Cout2, Cout, 1], post_bias: [Cout2]  (optional fusion).
    Returns [B, T, Cout_pad] (or [B, T, Cout2_pad] if fused), bf16.
    """
    B, T, cin_pad = x.shape
    cout, cin, K = weight.shape
    assert cin_pad == _pad_dim(cin), (cin_pad, cin)
    cout_pad = _pad_dim(cout)

    t_tile = min(t_tile, _round_up(T, 16))
    t_tile = max(t_tile, _round_up(K, 16))      # halo (K-1 rows) must fit in one tile
    n_tiles = (T + t_tile - 1) // t_tile
    total_len = (n_tiles + 1) * t_tile          # one extra tile so block i+1 is valid

    # Fold the 'same' left pad (PyTorch convention: left = (K-1)//2) into the
    # time padding; extra right zeros only feed output rows that get sliced off.
    left = (K - 1) // 2
    x = x.astype(jnp.bfloat16)
    x = jnp.pad(x, ((0, 0), (left, total_len - T - left), (0, 0)))

    # weight -> [K, Cin_pad, Cout_pad] bf16 (all taps VMEM-resident, constant map)
    w = jnp.transpose(weight, (2, 1, 0)).astype(jnp.bfloat16)
    w = jnp.pad(w, ((0, 0), (0, cin_pad - cin), (0, cout_pad - cout)))
    b = jnp.pad(bias.astype(jnp.float32), (0, cout_pad - cout)).reshape(1, cout_pad)

    fused = post_weight is not None
    args = [x, x, w, b]
    in_specs = [
        pl.BlockSpec((None, t_tile, cin_pad), lambda b_, i: (b_, i, 0)),
        pl.BlockSpec((None, t_tile, cin_pad), lambda b_, i: (b_, i + 1, 0)),
        pl.BlockSpec((K, cin_pad, cout_pad), lambda b_, i: (0, 0, 0)),
        pl.BlockSpec((1, cout_pad), lambda b_, i: (0, 0)),
    ]
    out_c_pad = cout_pad
    if fused:
        cout2, cin2, k2 = post_weight.shape
        assert k2 == 1 and cin2 == cout, (post_weight.shape, cout)
        cout2_pad = _pad_dim(cout2)
        w2 = post_weight[:, :, 0].T.astype(jnp.bfloat16)          # [Cout, Cout2]
        w2 = jnp.pad(w2, ((0, cout_pad - cout), (0, cout2_pad - cout2)))
        b2 = jnp.pad(post_bias.astype(jnp.float32),
                     (0, cout2_pad - cout2)).reshape(1, cout2_pad)
        args += [w2, b2]
        in_specs += [
            pl.BlockSpec((cout_pad, cout2_pad), lambda b_, i: (0, 0)),
            pl.BlockSpec((1, cout2_pad), lambda b_, i: (0, 0)),
        ]
        out_c_pad = cout2_pad

    out = pl.pallas_call(
        functools.partial(_same_conv_kernel, K=K, t_tile=t_tile, fused_post=fused),
        out_shape=jax.ShapeDtypeStruct((B, n_tiles * t_tile, out_c_pad), out_dtype),
        grid_spec=pltpu.PrefetchScalarGridSpec(
            num_scalar_prefetch=0,
            grid=(B, n_tiles),
            in_specs=in_specs,
            out_specs=pl.BlockSpec((None, t_tile, out_c_pad),
                                   lambda b_, i: (b_, i, 0)),
        ),
        compiler_params=pltpu.CompilerParams(
            dimension_semantics=("parallel", "parallel"),
            vmem_limit_bytes=_VMEM_LIMIT,
        ),
    )(*args)
    return out[:, :T, :]


# ----------------------------------------------------------------------------
# speeq.utils.utils.calc_data_len (integer tensor arithmetic, JAX port)
# ----------------------------------------------------------------------------
def calc_data_len(result_len, pad_len, data_len, kernel_size, stride):
    inp_len = data_len + pad_len
    convolved_pad_mask = (pad_len >= kernel_size).astype(jnp.int32)
    unconvolved = (inp_len - kernel_size) % stride
    undiscarded_pad_mask = (pad_len > unconvolved).astype(jnp.int32)
    convolved = pad_len - unconvolved
    new_pad_len = (convolved - kernel_size) // stride + 1
    new_pad_len = new_pad_len * convolved_pad_mask * undiscarded_pad_mask
    return result_len - new_pad_len


# ----------------------------------------------------------------------------
# Encoder wrapper (forward-pass semantics of the PyTorch module, eval mode)
# ----------------------------------------------------------------------------
class Wav2LetterEncoderPallas:
    def __init__(self, in_features, n_conv_layers, layers_kernel_size,
                 layers_channels_size, pre_conv_stride, pre_conv_kernel_size,
                 post_conv_channels_size, post_conv_kernel_size, p_dropout,
                 wav_kernel_size=None, wav_stride=None, key=None,
                 t_tile=256) -> None:
        self.is_wav = in_features == 1
        self.layers_channels_size = layers_channels_size
        self.pre_conv_stride = pre_conv_stride
        self.pre_conv_kernel_size = pre_conv_kernel_size
        self.post_conv_channels_size = post_conv_channels_size
        self.p_dropout = p_dropout  # nn.Dropout in eval mode == identity
        self.wav_kernel_size = wav_kernel_size
        self.wav_stride = wav_stride
        self.t_tile = t_tile

        if key is None:
            key = jax.random.PRNGKey(0)

        def make_conv(k, cin, cout, ksize):
            k1, k2 = jax.random.split(k)
            bound = 1.0 / math.sqrt(cin * ksize)   # PyTorch Conv1d default init
            w = jax.random.uniform(k1, (cout, cin, ksize), jnp.float32, -bound, bound)
            b = jax.random.uniform(k2, (cout,), jnp.float32, -bound, bound)
            return w, b

        keys = jax.random.split(key, n_conv_layers + 3)
        ki = 0
        self.raw_conv = None
        if self.is_wav:
            assert wav_kernel_size is not None and wav_stride is not None
            self.raw_conv = make_conv(keys[ki], 1, layers_channels_size,
                                      wav_kernel_size)
            ki += 1
        pre_in = layers_channels_size if self.is_wav else in_features
        self.pre_conv = make_conv(keys[ki], pre_in, layers_channels_size,
                                  pre_conv_kernel_size)
        ki += 1
        self.convs = []
        for _ in range(n_conv_layers - 1):
            self.convs.append(make_conv(keys[ki], layers_channels_size,
                                        layers_channels_size, layers_kernel_size))
            ki += 1
        self.convs.append(make_conv(keys[ki], layers_channels_size,
                                    post_conv_channels_size, post_conv_kernel_size))
        ki += 1
        self.post_conv = make_conv(keys[ki], post_conv_channels_size,
                                   post_conv_channels_size, 1)

    def forward(self, x, mask):
        """x: [B, M, d] float, mask: [B, M] bool (True == not padding).

        Returns (out [B, M', post_conv_channels_size], lengths [B]).
        """
        # Stays on device (PyTorch moves lengths to CPU; semantically identical).
        lengths = mask.sum(axis=-1).astype(jnp.int32)
        in_dtype = x.dtype
        out = x

        if self.is_wav:
            # TODO(synk): for very long raw-wav inputs the im2col materializes
            # [B, T_out, wav_K]; a strided in-kernel tap loop would avoid it.
            w, b = self.raw_conv
            prev_t = out.shape[1]
            res = conv1d_strided_pallas(out, w, b, stride=self.wav_stride,
                                        t_tile=self.t_tile)
            lengths = calc_data_len(res.shape[1], prev_t - lengths, lengths,
                                    self.wav_kernel_size, self.wav_stride)
            # Slice back to true channels so pre_conv's fused contraction pads
            # K*Cin (not per-tap 128s).
            out = res[:, :, : self.layers_channels_size]

        w, b = self.pre_conv
        prev_t = out.shape[1]
        res = conv1d_strided_pallas(out, w, b, stride=self.pre_conv_stride,
                                    t_tile=self.t_tile)
        lengths = calc_data_len(res.shape[1], prev_t - lengths, lengths,
                                self.pre_conv_kernel_size, self.pre_conv_stride)
        out = res                                   # [B, T, Cpad] bf16 lane-dense

        for (w, b) in self.convs[:-1]:              # stride-1 'same' body convs
            out = conv1d_same_pallas(out, w, b, t_tile=self.t_tile)

        # Last body conv with the kernel-size-1 post_conv (+ tanh) fused in.
        w, b = self.convs[-1]
        w2, b2 = self.post_conv
        out = conv1d_same_pallas(out, w, b, post_weight=w2, post_bias=b2,
                                 t_tile=self.t_tile)

        out = out[:, :, : self.post_conv_channels_size].astype(in_dtype)
        return out, lengths


# ----------------------------------------------------------------------------
# Pure-JAX f32 reference (for the self-check in __main__)
# ----------------------------------------------------------------------------
def _ref_conv1d(x, w, b, stride=1, same=False):
    K = w.shape[2]
    if same:
        left = (K - 1) // 2
        x = jnp.pad(x, ((0, 0), (left, K - 1 - left), (0, 0)))
    T = x.shape[1]
    t_out = (T - K) // stride + 1
    last = (t_out - 1) * stride + 1
    cols = jnp.stack([x[:, k: k + last: stride, :] for k in range(K)], axis=2)
    return jnp.einsum('btkc,ock->bto', cols, w) + b


def _reference_forward(enc, x, mask):
    lengths = mask.sum(axis=-1).astype(jnp.int32)
    out = x.astype(jnp.float32)
    if enc.is_wav:
        w, b = enc.raw_conv
        prev_t = out.shape[1]
        res = jnp.tanh(_ref_conv1d(out, w, b, stride=enc.wav_stride))
        lengths = calc_data_len(res.shape[1], prev_t - lengths, lengths,
                                enc.wav_kernel_size, enc.wav_stride)
        out = res
    w, b = enc.pre_conv
    prev_t = out.shape[1]
    res = jnp.tanh(_ref_conv1d(out, w, b, stride=enc.pre_conv_stride))
    lengths = calc_data_len(res.shape[1], prev_t - lengths, lengths,
                            enc.pre_conv_kernel_size, enc.pre_conv_stride)
    out = res
    for (w, b) in enc.convs:
        out = jnp.tanh(_ref_conv1d(out, w, b, stride=1, same=True))
    w, b = enc.post_conv
    out = jnp.tanh(_ref_conv1d(out, w, b, stride=1, same=True))
    return out, lengths


if __name__ == "__main__":
    # Small shapes consistent with the module's [B, M, d] convention.
    B, M, d = 2, 32, 13
    n_conv_layers = 3
    layers_kernel_size = 5
    layers_channels_size = 32
    pre_conv_stride = 2
    pre_conv_kernel_size = 5
    post_conv_channels_size = 40
    post_conv_kernel_size = 7

    key = jax.random.PRNGKey(0)
    kx, kp = jax.random.split(key)
    x = jax.random.normal(kx, (B, M, d), jnp.float32)
    seq_lens = jnp.array([32, 25], dtype=jnp.int32)
    mask = jnp.arange(M)[None, :] < seq_lens[:, None]   # [B, M] bool

    enc = Wav2LetterEncoderPallas(
        in_features=d,
        n_conv_layers=n_conv_layers,
        layers_kernel_size=layers_kernel_size,
        layers_channels_size=layers_channels_size,
        pre_conv_stride=pre_conv_stride,
        pre_conv_kernel_size=pre_conv_kernel_size,
        post_conv_channels_size=post_conv_channels_size,
        post_conv_kernel_size=post_conv_kernel_size,
        p_dropout=0.1,
        key=kp,
    )

    fwd = jax.jit(enc.forward)      # no host syncs anywhere in the forward
    out, lengths = fwd(x, mask)
    jax.block_until_ready(out)
    jax.block_until_ready(lengths)

    t_out = (M - pre_conv_kernel_size) // pre_conv_stride + 1
    assert out.shape == (B, t_out, post_conv_channels_size), out.shape
    assert lengths.shape == (B,), lengths.shape
    assert bool(jnp.all(jnp.isfinite(out)))

    # Correctness self-check vs. pure-JAX f32 reference (bf16-level tolerance).
    ref_out, ref_len = _reference_forward(enc, x, mask)
    max_err = float(jnp.max(jnp.abs(out.astype(jnp.float32) - ref_out)))
    assert max_err < 8e-2, f"max abs err vs reference = {max_err}"
    assert bool(jnp.all(lengths == ref_len)), (lengths, ref_len)

    print("KERNEL_OK")
</pallas_src>

<mosaic_0001>
module attributes {stable_mosaic.version = 11 : i64} {
  func.func @_same_conv_kernel(%arg0: i32, %arg1: i32, %arg2: memref<1x16x128xbf16, #tpu.memory_space<vmem>>, %arg3: memref<1x16x128xbf16, #tpu.memory_space<vmem>>, %arg4: memref<5x128x128xbf16, #tpu.memory_space<vmem>>, %arg5: memref<1x128xf32, #tpu.memory_space<vmem>>, %arg6: memref<1x16x128xbf16, #tpu.memory_space<vmem>>) attributes {dimension_semantics = [#tpu.dimension_semantics<parallel>, #tpu.dimension_semantics<parallel>], iteration_bounds = array<i64: 2, 1>, scalar_prefetch = 0 : i64, scratch_operands = 0 : i64, tpu.core_type = #tpu.core_type<tc>, window_params = [{transform_indices = @transform_0, window_bounds = array<i64: 1, 16, 128>}, {transform_indices = @transform_1, window_bounds = array<i64: 1, 16, 128>}, {pipeline_mode = #tpu.pipeline_mode<synchronous>, transform_indices = @transform_2, window_bounds = array<i64: 5, 128, 128>}, {pipeline_mode = #tpu.pipeline_mode<synchronous>, transform_indices = @transform_3, window_bounds = array<i64: 1, 128>}, {transform_indices = @transform_4, window_bounds = array<i64: 1, 16, 128>}]} {
    %c0 = arith.constant 0 : index
    %c0_0 = arith.constant 0 : index
    %c0_1 = arith.constant 0 : index
    %0 = vector.load %arg2[%c0, %c0_0, %c0_1] : memref<1x16x128xbf16, #tpu.memory_space<vmem>>, vector<1x16x128xbf16>
    %1 = vector.shape_cast %0 : vector<1x16x128xbf16> to vector<16x128xbf16>
    %c0_2 = arith.constant 0 : index
    %c0_3 = arith.constant 0 : index
    %c0_4 = arith.constant 0 : index
    %2 = vector.load %arg3[%c0_2, %c0_3, %c0_4] : memref<1x16x128xbf16, #tpu.memory_space<vmem>>, vector<1x16x128xbf16>
    %3 = vector.shape_cast %2 : vector<1x16x128xbf16> to vector<16x128xbf16>
    %4 = tpu.concatenate %1, %3 in 0 : vector<16x128xbf16>, vector<16x128xbf16> -> vector<32x128xbf16>
    %5 = vector.extract_strided_slice %4 {offsets = [0, 0], sizes = [16, 128], strides = [1, 1]} : vector<32x128xbf16> to vector<16x128xbf16>
    %c0_5 = arith.constant 0 : index
    %c0_6 = arith.constant 0 : index
    %c0_7 = arith.constant 0 : index
    %6 = vector.load %arg4[%c0_5, %c0_6, %c0_7] : memref<5x128x128xbf16, #tpu.memory_space<vmem>>, vector<1x128x128xbf16>
    %7 = vector.shape_cast %6 : vector<1x128x128xbf16> to vector<128x128xbf16>
    %cst = arith.constant dense<0.000000e+00> : vector<16x128xf32>
    %8 = tpu.matmul %5, %7, %cst {dimension_numbers = #tpu.dot_dimension_numbers<[1], [0], [0], [1], [0, 0, 1, 1], [], []>} : vector<16x128xbf16>, vector<128x128xbf16>, vector<16x128xf32> -> vector<16x128xf32>
    %9 = vector.extract_strided_slice %4 {offsets = [1, 0], sizes = [16, 128], strides = [1, 1]} : vector<32x128xbf16> to vector<16x128xbf16>
    %c1 = arith.constant 1 : index
    %c0_8 = arith.constant 0 : index
    %c0_9 = arith.constant 0 : index
    %10 = vector.load %arg4[%c1, %c0_8, %c0_9] : memref<5x128x128xbf16, #tpu.memory_space<vmem>>, vector<1x128x128xbf16>
    %11 = vector.shape_cast %10 : vector<1x128x128xbf16> to vector<128x128xbf16>
    %cst_10 = arith.constant dense<0.000000e+00> : vector<16x128xf32>
    %12 = tpu.matmul %9, %11, %cst_10 {dimension_numbers = #tpu.dot_dimension_numbers<[1], [0], [0], [1], [0, 0, 1, 1], [], []>} : vector<16x128xbf16>, vector<128x128xbf16>, vector<16x128xf32> -> vector<16x128xf32>
    %13 = arith.addf %8, %12 : vector<16x128xf32>
    %14 = vector.extract_strided_slice %4 {offsets = [2, 0], sizes = [16, 128], strides = [1, 1]} : vector<32x128xbf16> to vector<16x128xbf16>
    %c2 = arith.constant 2 : index
    %c0_11 = arith.constant 0 : index
    %c0_12 = arith.constant 0 : index
    %15 = vector.load %arg4[%c2, %c0_11, %c0_12] : memref<5x128x128xbf16, #tpu.memory_space<vmem>>, vector<1x128x128xbf16>
    %16 = vector.shape_cast %15 : vector<1x128x128xbf16> to vector<128x128xbf16>
    %cst_13 = arith.constant dense<0.000000e+00> : vector<16x128xf32>
    %17 = tpu.matmul %14, %16, %cst_13 {dimension_numbers = #tpu.dot_dimension_numbers<[1], [0], [0], [1], [0, 0, 1, 1], [], []>} : vector<16x128xbf16>, vector<128x128xbf16>, vector<16x128xf32> -> vector<16x128xf32>
    %18 = arith.addf %13, %17 : vector<16x128xf32>
    %19 = vector.extract_strided_slice %4 {offsets = [3, 0], sizes = [16, 128], strides = [1, 1]} : vector<32x128xbf16> to vector<16x128xbf16>
    %c3 = arith.constant 3 : index
    %c0_14 = arith.constant 0 : index
    %c0_15 = arith.constant 0 : index
    %20 = vector.load %arg4[%c3, %c0_14, %c0_15] : memref<5x128x128xbf16, #tpu.memory_space<vmem>>, vector<1x128x128xbf16>
    %21 = vector.shape_cast %20 : vector<1x128x128xbf16> to vector<128x128xbf16>
    %cst_16 = arith.constant dense<0.000000e+00> : vector<16x128xf32>
    %22 = tpu.matmul %19, %21, %cst_16 {dimension_numbers = #tpu.dot_dimension_numbers<[1], [0], [0], [1], [0, 0, 1, 1], [], []>} : vector<16x128xbf16>, vector<128x128xbf16>, vector<16x128xf32> -> vector<16x128xf32>
    %23 = arith.addf %18, %22 : vector<16x128xf32>
    %24 = vector.extract_strided_slice %4 {offsets = [4, 0], sizes = [16, 128], strides = [1, 1]} : vector<32x128xbf16> to vector<16x128xbf16>
    %c4 = arith.constant 4 : index
    %c0_17 = arith.constant 0 : index
    %c0_18 = arith.constant 0 : index
    %25 = vector.load %arg4[%c4, %c0_17, %c0_18] : memref<5x128x128xbf16, #tpu.memory_space<vmem>>, vector<1x128x128xbf16>
    %26 = vector.shape_cast %25 : vector<1x128x128xbf16> to vector<128x128xbf16>
    %cst_19 = arith.constant dense<0.000000e+00> : vector<16x128xf32>
    %27 = tpu.matmul %24, %26, %cst_19 {dimension_numbers = #tpu.dot_dimension_numbers<[1], [0], [0], [1], [0, 0, 1, 1], [], []>} : vector<16x128xbf16>, vector<128x128xbf16>, vector<16x128xf32> -> vector<16x128xf32>
    %28 = arith.addf %23, %27 : vector<16x128xf32>
    %c0_20 = arith.constant 0 : index
    %c0_21 = arith.constant 0 : index
    %29 = vector.load %arg5[%c0_20, %c0_21] : memref<1x128xf32, #tpu.memory_space<vmem>>, vector<1x128xf32>
    %30 = vector.broadcast %29 : vector<1x128xf32> to vector<16x128xf32>
    %31 = arith.addf %28, %30 : vector<16x128xf32>
    %32 = math.tanh %31 : vector<16x128xf32>
    %33 = arith.truncf %32 : vector<16x128xf32> to vector<16x128xbf16>
    %c0_22 = arith.constant 0 : index
    %c0_23 = arith.constant 0 : index
    %c0_24 = arith.constant 0 : index
    %34 = vector.load %arg6[%c0_22, %c0_23, %c0_24] : memref<1x16x128xbf16, #tpu.memory_space<vmem>>, vector<1x16x128xbf16>
    %35 = vector.shape_cast %34 : vector<1x16x128xbf16> to vector<16x128xbf16>
    %36 = vector.shape_cast %33 : vector<16x128xbf16> to vector<1x16x128xbf16>
    tpu.vector_store %arg6[%c0_22, %c0_23, %c0_24], %36 {strides = array<i32>} : memref<1x16x128xbf16, #tpu.memory_space<vmem>>, vector<1x16x128xbf16>,
    return
  }
  func.func @transform_0(%arg0: i32, %arg1: i32) -> (i32, i32, i32) {
    %c0_i32 = arith.constant 0 : i32
    %c0_i32_0 = arith.constant 0 : i32
    return %arg0, %arg1, %c0_i32 : i32, i32, i32
  }
  func.func @transform_1(%arg0: i32, %arg1: i32) -> (i32, i32, i32) {
    %c1_i32 = arith.constant 1 : i32
    %0 = arith.addi %arg1, %c1_i32 : i32
    %c0_i32 = arith.constant 0 : i32
    %c0_i32_0 = arith.constant 0 : i32
    return %arg0, %0, %c0_i32 : i32, i32, i32
  }
  func.func @transform_2(%arg0: i32, %arg1: i32) -> (i32, i32, i32) {
    %c0_i32 = arith.constant 0 : i32
    %c0_i32_0 = arith.constant 0 : i32
    %c0_i32_1 = arith.constant 0 : i32
    %c0_i32_2 = arith.constant 0 : i32
    return %c0_i32, %c0_i32_0, %c0_i32_1 : i32, i32, i32
  }
  func.func @transform_3(%arg0: i32, %arg1: i32) -> (i32, i32) {
    %c0_i32 = arith.constant 0 : i32
    %c0_i32_0 = arith.constant 0 : i32
    %c0_i32_1 = arith.constant 0 : i32
    return %c0_i32, %c0_i32_0 : i32, i32
  }
  func.func @transform_4(%arg0: i32, %arg1: i32) -> (i32, i32, i32) {
    %c0_i32 = arith.constant 0 : i32
    %c0_i32_0 = arith.constant 0 : i32
    return %arg0, %arg1, %c0_i32 : i32, i32, i32
  }
}

module attributes {stable_mosaic.version = 11 : i64} {
  func.func @_mm_bias_tanh_kernel(%arg0: i32, %arg1: i32, %arg2: memref<1x16x128xbf16, #tpu.memory_space<vmem>>, %arg3: memref<128x128xbf16, #tpu.memory_space<vmem>>, %arg4: memref<1x128xf32, #tpu.memory_space<vmem>>, %arg5: memref<1x16x128xbf16, #tpu.memory_space<vmem>>) attributes {dimension_semantics = [#tpu.dimension_semantics<parallel>, #tpu.dimension_semantics<parallel>], iteration_bounds = array<i64: 2, 1>, scalar_prefetch = 0 : i64, scratch_operands = 0 : i64, tpu.core_type = #tpu.core_type<tc>, window_params = [{transform_indices = @transform_0, window_bounds = array<i64: 1, 16, 128>}, {pipeline_mode = #tpu.pipeline_mode<synchronous>, transform_indices = @transform_1, window_bounds = array<i64: 128, 128>}, {pipeline_mode = #tpu.pipeline_mode<synchronous>, transform_indices = @transform_2, window_bounds = array<i64: 1, 128>}, {transform_indices = @transform_3, window_bounds = array<i64: 1, 16, 128>}]} {
    %c0 = arith.constant 0 : index
    %c0_0 = arith.constant 0 : index
    %c0_1 = arith.constant 0 : index
    %0 = vector.load %arg2[%c0, %c0_0, %c0_1] : memref<1x16x128xbf16, #tpu.memory_space<vmem>>, vector<1x16x128xbf16>
    %1 = vector.shape_cast %0 : vector<1x16x128xbf16> to vector<16x128xbf16>
    %c0_2 = arith.constant 0 : index
    %c0_3 = arith.constant 0 : index
    %2 = vector.load %arg3[%c0_2, %c0_3] : memref<128x128xbf16, #tpu.memory_space<vmem>>, vector<128x128xbf16>
    %cst = arith.constant dense<0.000000e+00> : vector<16x128xf32>
    %3 = tpu.matmul %1, %2, %cst {dimension_numbers = #tpu.dot_dimension_numbers<[1], [0], [0], [1], [0, 0, 1, 1], [], []>} : vector<16x128xbf16>, vector<128x128xbf16>, vector<16x128xf32> -> vector<16x128xf32>
    %c0_4 = arith.constant 0 : index
    %c0_5 = arith.constant 0 : index
    %4 = vector.load %arg4[%c0_4, %c0_5] : memref<1x128xf32, #tpu.memory_space<vmem>>, vector<1x128xf32>
    %5 = vector.broadcast %4 : vector<1x128xf32> to vector<16x128xf32>
    %6 = arith.addf %3, %5 : vector<16x128xf32>
    %7 = math.tanh %6 : vector<16x128xf32>
    %8 = arith.truncf %7 : vector<16x128xf32> to vector<16x128xbf16>
    %c0_6 = arith.constant 0 : index
    %c0_7 = arith.constant 0 : index
    %c0_8 = arith.constant 0 : index
    %9 = vector.load %arg5[%c0_6, %c0_7, %c0_8] : memref<1x16x128xbf16, #tpu.memory_space<vmem>>, vector<1x16x128xbf16>
    %10 = vector.shape_cast %9 : vector<1x16x128xbf16> to vector<16x128xbf16>
    %11 = vector.shape_cast %8 : vector<16x128xbf16> to vector<1x16x128xbf16>
    tpu.vector_store %arg5[%c0_6, %c0_7, %c0_8], %11 {strides = array<i32>} : memref<1x16x128xbf16, #tpu.memory_space<vmem>>, vector<1x16x128xbf16>,
    return
  }
  func.func @transform_0(%arg0: i32, %arg1: i32) -> (i32, i32, i32) {
    %c0_i32 = arith.constant 0 : i32
    %c0_i32_0 = arith.constant 0 : i32
    return %arg0, %arg1, %c0_i32 : i32, i32, i32
  }
  func.func @transform_1(%arg0: i32, %arg1: i32) -> (i32, i32) {
    %c0_i32 = arith.constant 0 : i32
    %c0_i32_0 = arith.constant 0 : i32
    %c0_i32_1 = arith.constant 0 : i32
    return %c0_i32, %c0_i32_0 : i32, i32
  }
  func.func @transform_2(%arg0: i32, %arg1: i32) -> (i32, i32) {
    %c0_i32 = arith.constant 0 : i32
    %c0_i32_0 = arith.constant 0 : i32
    %c0_i32_1 = arith.constant 0 : i32
    return %c0_i32, %c0_i32_0 : i32, i32
  }
  func.func @transform_3(%arg0: i32, %arg1: i32) -> (i32, i32, i32) {
    %c0_i32 = arith.constant 0 : i32
    %c0_i32_0 = arith.constant 0 : i32
    return %arg0, %arg1, %c0_i32 : i32, i32, i32
  }
}

module attributes {stable_mosaic.version = 11 : i64} {
  func.func @_same_conv_kernel(%arg0: i32, %arg1: i32, %arg2: memref<1x16x128xbf16, #tpu.memory_space<vmem>>, %arg3: memref<1x16x128xbf16, #tpu.memory_space<vmem>>, %arg4: memref<7x128x128xbf16, #tpu.memory_space<vmem>>, %arg5: memref<1x128xf32, #tpu.memory_space<vmem>>, %arg6: memref<128x128xbf16, #tpu.memory_space<vmem>>, %arg7: memref<1x128xf32, #tpu.memory_space<vmem>>, %arg8: memref<1x16x128xbf16, #tpu.memory_space<vmem>>) attributes {dimension_semantics = [#tpu.dimension_semantics<parallel>, #tpu.dimension_semantics<parallel>], iteration_bounds = array<i64: 2, 1>, scalar_prefetch = 0 : i64, scratch_operands = 0 : i64, tpu.core_type = #tpu.core_type<tc>, window_params = [{transform_indices = @transform_0, window_bounds = array<i64: 1, 16, 128>}, {transform_indices = @transform_1, window_bounds = array<i64: 1, 16, 128>}, {pipeline_mode = #tpu.pipeline_mode<synchronous>, transform_indices = @transform_2, window_bounds = array<i64: 7, 128, 128>}, {pipeline_mode = #tpu.pipeline_mode<synchronous>, transform_indices = @transform_3, window_bounds = array<i64: 1, 128>}, {pipeline_mode = #tpu.pipeline_mode<synchronous>, transform_indices = @transform_4, window_bounds = array<i64: 128, 128>}, {pipeline_mode = #tpu.pipeline_mode<synchronous>, transform_indices = @transform_5, window_bounds = array<i64: 1, 128>}, {transform_indices = @transform_6, window_bounds = array<i64: 1, 16, 128>}]} {
    %c0 = arith.constant 0 : index
    %c0_0 = arith.constant 0 : index
    %c0_1 = arith.constant 0 : index
    %0 = vector.load %arg2[%c0, %c0_0, %c0_1] : memref<1x16x128xbf16, #tpu.memory_space<vmem>>, vector<1x16x128xbf16>
    %1 = vector.shape_cast %0 : vector<1x16x128xbf16> to vector<16x128xbf16>
    %c0_2 = arith.constant 0 : index
    %c0_3 = arith.constant 0 : index
    %c0_4 = arith.constant 0 : index
    %2 = vector.load %arg3[%c0_2, %c0_3, %c0_4] : memref<1x16x128xbf16, #tpu.memory_space<vmem>>, vector<1x16x128xbf16>
    %3 = vector.shape_cast %2 : vector<1x16x128xbf16> to vector<16x128xbf16>
    %4 = tpu.concatenate %1, %3 in 0 : vector<16x128xbf16>, vector<16x128xbf16> -> vector<32x128xbf16>
    %5 = vector.extract_strided_slice %4 {offsets = [0, 0], sizes = [16, 128], strides = [1, 1]} : vector<32x128xbf16> to vector<16x128xbf16>
    %c0_5 = arith.constant 0 : index
    %c0_6 = arith.constant 0 : index
    %c0_7 = arith.constant 0 : index
    %6 = vector.load %arg4[%c0_5, %c0_6, %c0_7] : memref<7x128x128xbf16, #tpu.memory_space<vmem>>, vector<1x128x128xbf16>
    %7 = vector.shape_cast %6 : vector<1x128x128xbf16> to vector<128x128xbf16>
    %cst = arith.constant dense<0.000000e+00> : vector<16x128xf32>
    %8 = tpu.matmul %5, %7, %cst {dimension_numbers = #tpu.dot_dimension_numbers<[1], [0], [0], [1], [0, 0, 1, 1], [], []>} : vector<16x128xbf16>, vector<128x128xbf16>, vector<16x128xf32> -> vector<16x128xf32>
    %9 = vector.extract_strided_slice %4 {offsets = [1, 0], sizes = [16, 128], strides = [1, 1]} : vector<32x128xbf16> to vector<16x128xbf16>
    %c1 = arith.constant 1 : index
    %c0_8 = arith.constant 0 : index
    %c0_9 = arith.constant 0 : index
    %10 = vector.load %arg4[%c1, %c0_8, %c0_9] : memref<7x128x128xbf16, #tpu.memory_space<vmem>>, vector<1x128x128xbf16>
    %11 = vector.shape_cast %10 : vector<1x128x128xbf16> to vector<128x128xbf16>
    %cst_10 = arith.constant dense<0.000000e+00> : vector<16x128xf32>
    %12 = tpu.matmul %9, %11, %cst_10 {dimension_numbers = #tpu.dot_dimension_numbers<[1], [0], [0], [1], [0, 0, 1, 1], [], []>} : vector<16x128xbf16>, vector<128x128xbf16>, vector<16x128xf32> -> vector<16x128xf32>
    %13 = arith.addf %8, %12 : vector<16x128xf32>
    %14 = vector.extract_strided_slice %4 {offsets = [2, 0], sizes = [16, 128], strides = [1, 1]} : vector<32x128xbf16> to vector<16x128xbf16>
    %c2 = arith.constant 2 : index
    %c0_11 = arith.constant 0 : index
    %c0_12 = arith.constant 0 : index
    %15 = vector.load %arg4[%c2, %c0_11, %c0_12] : memref<7x128x128xbf16, #tpu.memory_space<vmem>>, vector<1x128x128xbf16>
    %16 = vector.shape_cast %15 : vector<1x128x128xbf16> to vector<128x128xbf16>
    %cst_13 = arith.constant dense<0.000000e+00> : vector<16x128xf32>
    %17 = tpu.matmul %14, %16, %cst_13 {dimension_numbers = #tpu.dot_dimension_numbers<[1], [0], [0], [1], [0, 0, 1, 1], [], []>} : vector<16x128xbf16>, vector<128x128xbf16>, vector<16x128xf32> -> vector<16x128xf32>
    %18 = arith.addf %13, %17 : vector<16x128xf32>
    %19 = vector.extract_strided_slice %4 {offsets = [3, 0], sizes = [16, 128], strides = [1, 1]} : vector<32x128xbf16> to vector<16x128xbf16>
    %c3 = arith.constant 3 : index
    %c0_14 = arith.constant 0 : index
    %c0_15 = arith.constant 0 : index
    %20 = vector.load %arg4[%c3, %c0_14, %c0_15] : memref<7x128x128xbf16, #tpu.memory_space<vmem>>, vector<1x128x128xbf16>
    %21 = vector.shape_cast %20 : vector<1x128x128xbf16> to vector<128x128xbf16>
    %cst_16 = arith.constant dense<0.000000e+00> : vector<16x128xf32>
    %22 = tpu.matmul %19, %21, %cst_16 {dimension_numbers = #tpu.dot_dimension_numbers<[1], [0], [0], [1], [0, 0, 1, 1], [], []>} : vector<16x128xbf16>, vector<128x128xbf16>, vector<16x128xf32> -> vector<16x128xf32>
    %23 = arith.addf %18, %22 : vector<16x128xf32>
    %24 = vector.extract_strided_slice %4 {offsets = [4, 0], sizes = [16, 128], strides = [1, 1]} : vector<32x128xbf16> to vector<16x128xbf16>
    %c4 = arith.constant 4 : index
    %c0_17 = arith.constant 0 : index
    %c0_18 = arith.constant 0 : index
    %25 = vector.load %arg4[%c4, %c0_17, %c0_18] : memref<7x128x128xbf16, #tpu.memory_space<vmem>>, vector<1x128x128xbf16>
    %26 = vector.shape_cast %25 : vector<1x128x128xbf16> to vector<128x128xbf16>
    %cst_19 = arith.constant dense<0.000000e+00> : vector<16x128xf32>
    %27 = tpu.matmul %24, %26, %cst_19 {dimension_numbers = #tpu.dot_dimension_numbers<[1], [0], [0], [1], [0, 0, 1, 1], [], []>} : vector<16x128xbf16>, vector<128x128xbf16>, vector<16x128xf32> -> vector<16x128xf32>
    %28 = arith.addf %23, %27 : vector<16x128xf32>
    %29 = vector.extract_strided_slice %4 {offsets = [5, 0], sizes = [16, 128], strides = [1, 1]} : vector<32x128xbf16> to vector<16x128xbf16>
    %c5 = arith.constant 5 : index
    %c0_20 = arith.constant 0 : index
    %c0_21 = arith.constant 0 : index
    %30 = vector.load %arg4[%c5, %c0_20, %c0_21] : memref<7x128x128xbf16, #tpu.memory_space<vmem>>, vector<1x128x128xbf16>
    %31 = vector.shape_cast %30 : vector<1x128x128xbf16> to vector<128x128xbf16>
    %cst_22 = arith.constant dense<0.000000e+00> : vector<16x128xf32>
    %32 = tpu.matmul %29, %31, %cst_22 {dimension_numbers = #tpu.dot_dimension_numbers<[1], [0], [0], [1], [0, 0, 1, 1], [], []>} : vector<16x128xbf16>, vector<128x128xbf16>, vector<16x128xf32> -> vector<16x128xf32>
    %33 = arith.addf %28, %32 : vector<16x128xf32>
    %34 = vector.extract_strided_slice %4 {offsets = [6, 0], sizes = [16, 128], strides = [1, 1]} : vector<32x128xbf16> to vector<16x128xbf16>
    %c6 = arith.constant 6 : index
    %c0_23 = arith.constant 0 : index
    %c0_24 = arith.constant 0 : index
    %35 = vector.load %arg4[%c6, %c0_23, %c0_24] : memref<7x128x128xbf16, #tpu.memory_space<vmem>>, vector<1x128x128xbf16>
    %36 = vector.shape_cast %35 : vector<1x128x128xbf16> to vector<128x128xbf16>
    %cst_25 = arith.constant dense<0.000000e+00> : vector<16x128xf32>
    %37 = tpu.matmul %34, %36, %cst_25 {dimension_numbers = #tpu.dot_dimension_numbers<[1], [0], [0], [1], [0, 0, 1, 1], [], []>} : vector<16x128xbf16>, vector<128x128xbf16>, vector<16x128xf32> -> vector<16x128xf32>
    %38 = arith.addf %33, %37 : vector<16x128xf32>
    %c0_26 = arith.constant 0 : index
    %c0_27 = arith.constant 0 : index
    %39 = vector.load %arg5[%c0_26, %c0_27] : memref<1x128xf32, #tpu.memory_space<vmem>>, vector<1x128xf32>
    %40 = vector.broadcast %39 : vector<1x128xf32> to vector<16x128xf32>
    %41 = arith.addf %38, %40 : vector<16x128xf32>
    %42 = math.tanh %41 : vector<16x128xf32>
    %43 = arith.truncf %42 : vector<16x128xf32> to vector<16x128xbf16>
    %c0_28 = arith.constant 0 : index
    %c0_29 = arith.constant 0 : index
    %44 = vector.load %arg6[%c0_28, %c0_29] : memref<128x128xbf16, #tpu.memory_space<vmem>>, vector<128x128xbf16>
    %cst_30 = arith.constant dense<0.000000e+00> : vector<16x128xf32>
    %45 = tpu.matmul %43, %44, %cst_30 {dimension_numbers = #tpu.dot_dimension_numbers<[1], [0], [0], [1], [0, 0, 1, 1], [], []>} : vector<16x128xbf16>, vector<128x128xbf16>, vector<16x128xf32> -> vector<16x128xf32>
    %c0_31 = arith.constant 0 : index
    %c0_32 = arith.constant 0 : index
    %46 = vector.load %arg7[%c0_31, %c0_32] : memref<1x128xf32, #tpu.memory_space<vmem>>, vector<1x128xf32>
    %47 = vector.broadcast %46 : vector<1x128xf32> to vector<16x128xf32>
    %48 = arith.addf %45, %47 : vector<16x128xf32>
    %49 = math.tanh %48 : vector<16x128xf32>
    %50 = arith.truncf %49 : vector<16x128xf32> to vector<16x128xbf16>
    %c0_33 = arith.constant 0 : index
    %c0_34 = arith.constant 0 : index
    %c0_35 = arith.constant 0 : index
    %51 = vector.load %arg8[%c0_33, %c0_34, %c0_35] : memref<1x16x128xbf16, #tpu.memory_space<vmem>>, vector<1x16x128xbf16>
    %52 = vector.shape_cast %51 : vector<1x16x128xbf16> to vector<16x128xbf16>
    %53 = vector.shape_cast %50 : vector<16x128xbf16> to vector<1x16x128xbf16>
    tpu.vector_store %arg8[%c0_33, %c0_34, %c0_35], %53 {strides = array<i32>} : memref<1x16x128xbf16, #tpu.memory_space<vmem>>, vector<1x16x128xbf16>,
    return
  }
  func.func @transform_0(%arg0: i32, %arg1: i32) -> (i32, i32, i32) {
    %c0_i32 = arith.constant 0 : i32
    %c0_i32_0 = arith.constant 0 : i32
    return %arg0, %arg1, %c0_i32 : i32, i32, i32
  }
  func.func @transform_1(%arg0: i32, %arg1: i32) -> (i32, i32, i32) {
    %c1_i32 = arith.constant 1 : i32
    %0 = arith.addi %arg1, %c1_i32 : i32
    %c0_i32 = arith.constant 0 : i32
    %c0_i32_0 = arith.constant 0 : i32
    return %arg0, %0, %c0_i32 : i32, i32, i32
  }
  func.func @transform_2(%arg0: i32, %arg1: i32) -> (i32, i32, i32) {
    %c0_i32 = arith.constant 0 : i32
    %c0_i32_0 = arith.constant 0 : i32
    %c0_i32_1 = arith.constant 0 : i32
    %c0_i32_2 = arith.constant 0 : i32
    return %c0_i32, %c0_i32_0, %c0_i32_1 : i32, i32, i32
  }
  func.func @transform_3(%arg0: i32, %arg1: i32) -> (i32, i32) {
    %c0_i32 = arith.constant 0 : i32
    %c0_i32_0 = arith.constant 0 : i32
    %c0_i32_1 = arith.constant 0 : i32
    return %c0_i32, %c0_i32_0 : i32, i32
  }
  func.func @transform_4(%arg0: i32, %arg1: i32) -> (i32, i32) {
    %c0_i32 = arith.constant 0 : i32
    %c0_i32_0 = arith.constant 0 : i32
    %c0_i32_1 = arith.constant 0 : i32
    return %c0_i32, %c0_i32_0 : i32, i32
  }
  func.func @transform_5(%arg0: i32, %arg1: i32) -> (i32, i32) {
    %c0_i32 = arith.constant 0 : i32
    %c0_i32_0 = arith.constant 0 : i32
    %c0_i32_1 = arith.constant 0 : i32
    return %c0_i32, %c0_i32_0 : i32, i32
  }
  func.func @transform_6(%arg0: i32, %arg1: i32) -> (i32, i32, i32) {
    %c0_i32 = arith.constant 0 : i32
    %c0_i32_0 = arith.constant 0 : i32
    return %arg0, %arg1, %c0_i32 : i32, i32, i32
  }
}

</mosaic_0001>

<bundles_post_ra>
// kernel: forward.4
= control target key start
LH: loop header
LB: loop body
LE: loop exit
PB: predicated region body
PF: predicated region fallthrough
CT: control target
= control target key end

     0   :  { %s576_s12 = smov 0   ;;  %s578_s13 = smov 0   ;;  %s643_s0 = inlined_call_operand.vmem [shape: bf16[2,16,128], index: 0, kind: input, shape index: {}]   ;;  %s644_s1 = inlined_call_operand.vmem [shape: bf16[128,128], index: 1, kind: input, shape index: {}]   ;;  %s645_s2 = inlined_call_operand.vmem [shape: f32[1,128], index: 2, kind: input, shape index: {}]   ;;  %s646_s3 = inlined_call_operand.vmem [shape: bf16[2,16,128], index: 3, kind: output, shape index: {}]  }
   0x1   :  { %s580_s14 = smov 0  }
   0x2 LB: > { %s25_s15 = sadd.s32 1, %s548_s13  ;;  %p434_p0 = scmp.ge.s32.totalorder %s552_s14, 1  ;;  %s552_s14 = sphi %s580_s14, %s13_s14   ;;  %s548_s13 = sphi %s578_s13, %s648_s13   ;;  %s544_s12 = sphi %s576_s12, %s647_s12  }
   0x3   : > { %p27_p1 = scmp.ge.s32.totalorder %s25_s15, 2  ;;  %p158_p2 = scmp.lt.s32.totalorder %s552_s14, 3 }
   0x5   : > { %s650_s15 = smov (%p27_p1, %s25_s15), 0  ;;  %p159_p3 = pnand %p434_p0, %p158_p2 }
   0x6   : > { %p191_p4 = scmp.lt.s32.totalorder (!%p159_p3), %s544_s12, 1 }
   0x7   : > { %162 = sbr.rel (%p159_p3) target bundleno = 261 (0x105), region = 32 }
   0xc   : > { %v517_v0 = vld [vmem:[%s644_s1 + $0x38] sm:$0xff]   ;;  %v554_v1 = vmov 0.0   ;;  %v518_v2 = vld [vmem:[%s644_s1 + $0x30] sm:$0xff]   ;;  %vm555_vm0 = vmmov 0   ;;  %s652_s12 = smov (!%p191_p4, %s544_s12), 1  ;;  %v519_v3 = vld [vmem:[%s644_s1 + $0x28] sm:$0xff]  }
   0xd   : > { %471 = vmatprep.subr.bf16.mxu0 %v554_v1  ;;  %487 = vmatprep.mubr.msk.bf16.mxu0 %vm555_vm0, %v554_v1  ;;  %s453_s22 = sshll.u32 %s652_s12, 3  ;;  %v520_v4 = vld [vmem:[%s644_s1 + $0x20] sm:$0xff]   ;;  %v521_v5 = vld [vmem:[%s644_s1 + $0x18] sm:$0xff]   ;;  %v522_v6 = vld [vmem:[%s644_s1 + $0x10] sm:$0xff]  }
   0xe   : > { %472 = vmatpush3.bf16.msra.mxu0 %v517_v0  ;;  %s198_s25 = scalar_lea.vmem %s643_s0, %s453_s22  ;;  %v523_v7 = vld [vmem:[%s644_s1 + $0x8] sm:$0xff]   ;;  %v524_v8 = vld [vmem:[%s644_s1] sm:$0xff]   ;;  %s208_s17 = scalar_lea.vmem %s646_s3, %s453_s22 }
   0xf   : > { %473 = vmatprep.subr.bf16.mxu0 %v554_v1  ;;  %v525_v9 = vld [vmem:[%s198_s25] sm:$0xff]  }
  0x10   : > { %v439_v10 = vld [vmem:[%s645_s2] ss:$0 sm:$0xff] }
  0x12   : > { %474 = vmatpush3.bf16.msra.mxu0 %v518_v2 }
  0x13   : > { %475 = vmatprep.subr.bf16.mxu0 %v554_v1 }
  0x16   : > { %476 = vmatpush3.bf16.msra.mxu0 %v519_v3 }
  0x17   : > { %477 = vmatprep.subr.bf16.mxu0 %v554_v1 }
  0x1a   : > { %478 = vmatpush3.bf16.msra.mxu0 %v520_v4 }
  0x1b   : > { %479 = vmatprep.subr.bf16.mxu0 %v554_v1 }
  0x1e   : > { %480 = vmatpush3.bf16.msra.mxu0 %v521_v5 }
  0x1f   : > { %481 = vmatprep.subr.bf16.mxu0 %v554_v1 }
  0x22   : > { %482 = vmatpush3.bf16.msra.mxu0 %v522_v6 }
  0x23   : > { %483 = vmatprep.subr.bf16.mxu0 %v554_v1 }
  0x26   : > { %484 = vmatpush3.bf16.msra.mxu0 %v523_v7 }
  0x27   : > { %485 = vmatprep.subr.bf16.mxu0 %v554_v1 }
  0x2a   : > { %486 = vmatpush3.bf16.msra.mxu0 %v524_v8 }
  0x2d   : > { %488 = vmatmul.mubr.bf16.vlgmr.msra.gmra.mxu0 %v525_v9 }
  0xed   : > { %v324_v11 = vpop.f32.mrf.mxu0 }
  0xee   : > { %v325_v12 = vadd.f32 %v439_v10, %v324_v11 }
  0xef   : > { %v489_v13 = vpop.f32.mrf.mxu0 }
  0xf0   : > { %526 = vtanh.f32 %v325_v12 }
  0xf1   : > { %v327_v14 = vpop.f32.mrf.mxu0 }
  0xf2   : > { %v328_v15 = vadd.f32 %v439_v10, %v327_v14 }
  0xf3   : > { %v490_v16 = vpop.f32.mrf.mxu0 }
  0xf4   : > { %528 = vtanh.f32 %v328_v15 }
  0xfd   : > { %v527_v17 = vpop.eup %526 }
 0x101   : > { %v529_v18 = vpop.eup %528 }
 0x102   : > { %v460_v19 = vpack.c.bf16 %v529_v18, %v527_v17 }
 0x104   : > { %461 = vst [vmem:[%s208_s17] sm:$0xff] %v460_v19  }
 0x105 PF: > { %s13_s14 = sadd.s32 1, %s552_s14   ;;  %s647_s12 = smov %s548_s13 }
 0x106   : > { %p10_p5 = scmp.ge.s32.totalorder %s13_s14, 4   ;;  %s648_s13 = smov %s650_s15 }
 0x108   :  { %12 = sbr.rel (!%p10_p5) target bundleno = 2 (0x2), region = 62 }

// kernel: forward.5
= control target key start
LH: loop header
LB: loop body
LE: loop exit
PB: predicated region body
PF: predicated region fallthrough
CT: control target
= control target key end

     0   :  { %s1394_s15 = smov 0   ;;  %s1396_s16 = smov 0   ;;  %s1635_s0 = inlined_call_operand.vmem [shape: bf16[2,32,128], index: 0, kind: input, shape index: {}, may-alias: {0,1}]   ;;  %s1636_s1 = inlined_call_operand.vmem [shape: bf16[2,32,128], index: 1, kind: input, shape index: {}, may-alias: {0,1}]   ;;  %s1637_s2 = inlined_call_operand.vmem [shape: bf16[5,128,128], index: 2, kind: input, shape index: {}]   ;;  %s1638_s3 = inlined_call_operand.vmem [shape: f32[1,128], index: 3, kind: input, shape index: {}]   ;;  %s1639_s4 = inlined_call_operand.vmem [shape: bf16[2,16,128], index: 4, kind: output, shape index: {}]  }
   0x1   :  { %s1398_s17 = smov 0  }
   0x2 LB: > { %s26_s18 = sadd.s32 1, %s1361_s16  ;;  %p996_p0 = scmp.ge.s32.totalorder %s1365_s17, 1  ;;  %s1365_s17 = sphi %s1398_s17, %s14_s17   ;;  %s1361_s16 = sphi %s1396_s16, %s1641_s16   ;;  %s1357_s15 = sphi %s1394_s15, %s1640_s15  }
   0x3   : > { %p28_p1 = scmp.ge.s32.totalorder %s26_s18, 2  ;;  %p204_p2 = scmp.lt.s32.totalorder %s1365_s17, 3 }
   0x5   : > { %s1643_s18 = smov (%p28_p1, %s26_s18), 0  ;;  %p205_p3 = pnand %p996_p0, %p204_p2 }
   0x6   : > { %p249_p4 = scmp.lt.s32.totalorder (!%p205_p3), %s1357_s15, 1 }
   0x7   : > { %208 = sbr.rel (%p205_p3) target bundleno = 327 (0x147), region = 36 }
   0xc   : > { %v1297_v0 = vld [vmem:[%s1637_s2 + $0x78] sm:$0xff]   ;;  %v1367_v1 = vmov 0.0   ;;  %v1299_v3 = vld [vmem:[%s1637_s2 + $0x70] sm:$0xff]   ;;  %vm1368_vm0 = vmmov 0   ;;  %s1645_s15 = smov (!%p249_p4, %s1357_s15), 1  ;;  %v1301_v5 = vld [vmem:[%s1637_s2 + $0x68] sm:$0xff]  }
   0xd   : > { %1171 = vmatprep.subr.bf16.mxu0 %v1367_v1  ;;  %1191 = vmatprep.subr.bf16.mxu1 %v1367_v1  ;;  %v1298_v2 = vld [vmem:[%s1637_s2 + $0x38] sm:$0xff]   ;;  %v1300_v4 = vld [vmem:[%s1637_s2 + $0x30] sm:$0xff]   ;;  %v1302_v6 = vld [vmem:[%s1637_s2 + $0x28] sm:$0xff]   ;;  %s1114_s5 = sshll.u32 %s1645_s15, 4  ;;  %vm329_vm1 = vsmask.f32 7424 }
   0xe   : > { %1172 = vmatpush3.bf16.msra.mxu0 %v1297_v0  ;;  %1187 = vmatprep.mubr.msk.bf16.mxu0 %vm1368_vm0, %v1367_v1  ;;  %v1303_v7 = vld [vmem:[%s1637_s2 + $0x60] sm:$0xff]   ;;  %s1116_s10 = sadd.s32 8, %s1114_s5  ;;  %v1305_v9 = vld [vmem:[%s1637_s2 + $0x58] sm:$0xff]   ;;  %s256_s19 = scalar_lea.vmem %s1635_s0, %s1114_s5  ;;  %v1307_v13 = vld [vmem:[%s1637_s2 + $0x50] sm:$0xff]   ;;  %vm770_vm2 = vcmask 1045504   ;;  %vm538_vm3 = vcmask 1046528  }
   0xf   : > { %1192 = vmatpush3.bf16.msra.mxu1 %v1298_v2  ;;  %1173 = vmatprep.subr.bf16.mxu0 %v1367_v1  ;;  %v1304_v8 = vld [vmem:[%s1637_s2 + $0x20] sm:$0xff]   ;;  %s267_s22 = scalar_lea.vmem %s1636_s1, %s1116_s10  ;;  %v1306_v10 = vld [vmem:[%s1637_s2 + $0x18] sm:$0xff]   ;;  %v1308_v14 = vld [vmem:[%s1637_s2 + $0x10] sm:$0xff]   ;;  %vm651_vm4 = vsmask.f32 6400  ;;  %s1117_s21 = sshll.u32 %s1645_s15, 3 }
  0x10   : > { %1193 = vmatprep.subr.bf16.mxu1 %v1367_v1  ;;  %1207 = vmatprep.mubr.msk.bf16.mxu1 %vm1368_vm0, %v1367_v1  ;;  %v1465_v11 = vld [vmem:[%s256_s19] sm:$0xff]   ;;  %v1309_v16 = vld [vmem:[%s1637_s2 + $0x48] sm:$0xff]   ;;  %v1315_v26 = vld [vmem:[%s1637_s2 + $0xb8] sm:$0xff]   ;;  %s278_s24 = scalar_lea.vmem %s1639_s4, %s1117_s21 }
  0x11   : > { %v1467_v12 = vld [vmem:[%s267_s22] sm:$0xff]   ;;  %v333_v15 = vshll.u32 %v1465_v11, 16  ;;  %v331_v17 = vshrl.u32 %v1465_v11, 16  ;;  %v1310_v20 = vld [vmem:[%s1637_s2 + $0x8] sm:$0xff]   ;;  %v771_v27 = vrot.slane %v1465_v11, 2  ;;  %v1316_v28 = vld [vmem:[%s1637_s2 + $0xf8] sm:$0xff]  }
  0x12   : > { %1174 = vmatpush3.bf16.msra.mxu0 %v1299_v3  ;;  %v338_v19 = vshll.u32 %v1467_v12, 16  ;;  %v1311_v21 = vld [vmem:[%s1637_s2 + $0x40] sm:$0xff]   ;;  %v772_v29 = vrot.slane %v1467_v12, 2  ;;  %v1317_v31 = vld [vmem:[%s1637_s2 + $0xb0] sm:$0xff]   ;;  %v1319_v33 = vld [vmem:[%s1637_s2 + $0xa8] sm:$0xff]   ;;  %v655_v41 = vshrl.u32 %v1467_v12, 16 }
  0x13   : > { %1194 = vmatpush3.bf16.msra.mxu1 %v1300_v4  ;;  %1175 = vmatprep.subr.bf16.mxu0 %v1367_v1  ;;  %v335_v18 = vrot.slane %v333_v15, 1  ;;  %v1312_v22 = vld [vmem:[%s1637_s2] sm:$0xff]   ;;  %v1318_v32 = vld [vmem:[%s1637_s2 + $0xf0] sm:$0xff]   ;;  %v1320_v34 = vld [vmem:[%s1637_s2 + $0xe8] sm:$0xff]   ;;  %v652_v44 = vrot.slane %v331_v17, 1  ;;  %v653_v45 = vrot.slane %v333_v15, 2 }
  0x14   : > { %1195 = vmatprep.subr.bf16.mxu1 %v1367_v1  ;;  %v340_v24 = vrot.slane %v338_v19, 1  ;;  %v1512_v30 = vsel %vm770_vm2, %v771_v27, %v772_v29  ;;  %v1321_v35 = vld [vmem:[%s1637_s2 + $0xa0] sm:$0xff]   ;;  %v1323_v37 = vld [vmem:[%s1637_s2 + $0x98] sm:$0xff]   ;;  %v1325_v39 = vld [vmem:[%s1637_s2 + $0x90] sm:$0xff]   ;;  %v657_v46 = vrot.slane %v655_v41, 1  ;;  %v658_v47 = vrot.slane %v338_v19, 2 }
  0x15   : > { %v336_v23 = vor.u32 %v335_v18, %v331_v17  ;;  %v1322_v36 = vld [vmem:[%s1637_s2 + $0xe0] sm:$0xff]   ;;  %v1324_v38 = vld [vmem:[%s1637_s2 + $0xd8] sm:$0xff]   ;;  %v1326_v40 = vld [vmem:[%s1637_s2 + $0xd0] sm:$0xff]   ;;  %v539_v49 = vrot.slane %v1465_v11, 1  ;;  %v540_v50 = vrot.slane %v1467_v12, 1  ;;  %v654_v52 = vor.u32 %v653_v45, %v652_v44 }
  0x16   : > { %1176 = vmatpush3.bf16.msra.mxu0 %v1301_v5  ;;  %v1327_v42 = vld [vmem:[%s1637_s2 + $0x88] sm:$0xff]   ;;  %v1329_v48 = vld [vmem:[%s1637_s2 + $0x80] sm:$0xff]   ;;  %v659_v53 = vor.u32 %v658_v47, %v657_v46  ;;  %v1331_v55 = vld [vmem:[%s1637_s2 + $0x138] sm:$0xff]  }
  0x17   : > { %1196 = vmatpush3.bf16.msra.mxu1 %v1302_v6  ;;  %1177 = vmatprep.subr.bf16.mxu0 %v1367_v1  ;;  %v341_v25 = vsel %vm329_vm1, %v336_v23, %v340_v24  ;;  %v1328_v43 = vld [vmem:[%s1637_s2 + $0xc8] sm:$0xff]   ;;  %v1330_v51 = vld [vmem:[%s1637_s2 + $0xc0] sm:$0xff]   ;;  %v541_v54 = vsel %vm538_vm3, %v539_v49, %v540_v50  ;;  %v1332_v57 = vld [vmem:[%s1637_s2 + $0x130] sm:$0xff]  }
  0x18   : > { %1197 = vmatprep.subr.bf16.mxu1 %v1367_v1  ;;  %v660_v56 = vsel %vm651_vm4, %v654_v52, %v659_v53  ;;  %v1333_v58 = vld [vmem:[%s1637_s2 + $0x128] sm:$0xff]   ;;  %v1334_v59 = vld [vmem:[%s1637_s2 + $0x120] sm:$0xff]   ;;  %v1335_v60 = vld [vmem:[%s1637_s2 + $0x118] sm:$0xff]  }
  0x19   : > { %v1336_v61 = vld [vmem:[%s1637_s2 + $0x110] sm:$0xff]   ;;  %v1337_v62 = vld [vmem:[%s1637_s2 + $0x108] sm:$0xff]   ;;  %v1338_v63 = vld [vmem:[%s1637_s2 + $0x100] sm:$0xff]  }
  0x1a   : > { %1178 = vmatpush3.bf16.msra.mxu0 %v1303_v7  ;;  %v1109_v23 = vld [vmem:[%s1638_s3] ss:$0 sm:$0xff] }
  0x1b   : > { %1198 = vmatpush3.bf16.msra.mxu1 %v1304_v8  ;;  %1179 = vmatprep.subr.bf16.mxu0 %v1367_v1 }
  0x1c   : > { %1199 = vmatprep.subr.bf16.mxu1 %v1367_v1 }
  0x1e   : > { %1180 = vmatpush3.bf16.msra.mxu0 %v1305_v9 }
  0x1f   : > { %1200 = vmatpush3.bf16.msra.mxu1 %v1306_v10  ;;  %1181 = vmatprep.subr.bf16.mxu0 %v1367_v1 }
  0x20   : > { %1201 = vmatprep.subr.bf16.mxu1 %v1367_v1 }
  0x22   : > { %1182 = vmatpush3.bf16.msra.mxu0 %v1307_v13 }
  0x23   : > { %1202 = vmatpush3.bf16.msra.mxu1 %v1308_v14  ;;  %1183 = vmatprep.subr.bf16.mxu0 %v1367_v1 }
  0x24   : > { %1203 = vmatprep.subr.bf16.mxu1 %v1367_v1 }
  0x26   : > { %1184 = vmatpush3.bf16.msra.mxu0 %v1309_v16 }
  0x27   : > { %1204 = vmatpush3.bf16.msra.mxu1 %v1310_v20  ;;  %1185 = vmatprep.subr.bf16.mxu0 %v1367_v1 }
  0x28   : > { %1205 = vmatprep.subr.bf16.mxu1 %v1367_v1 }
  0x2a   : > { %1186 = vmatpush3.bf16.msra.mxu0 %v1311_v21 }
  0x2b   : > { %1206 = vmatpush3.bf16.msra.mxu1 %v1312_v22  ;;  %1211 = vmatprep.subr.bf16.mxu0 %v1367_v1 }
  0x2c   : > { %1231 = vmatprep.subr.bf16.mxu1 %v1367_v1 }
  0x2d   : > { %1188 = vmatmul.mubr.bf16.vlgmr.msra.gmra.mxu0 %v341_v25 }
  0x2e   : > { %1208 = vmatmul.mubr.bf16.vlgmr.msra.gmra.mxu1 %v1465_v11  ;;  %1212 = vmatpush3.bf16.msra.mxu0 %v1315_v26 }
  0x2f   : > { %1232 = vmatpush3.bf16.msra.mxu1 %v1316_v28  ;;  %1213 = vmatprep.subr.bf16.mxu0 %v1367_v1 }
  0x30   : > { %1233 = vmatprep.subr.bf16.mxu1 %v1367_v1  ;;  %1227 = vmatprep.mubr.msk.bf16.mxu0 %vm1368_vm0, %v1367_v1 }
  0x31   : > { %1247 = vmatprep.mubr.msk.bf16.mxu1 %vm1368_vm0, %v1367_v1 }
  0x32   : > { %1214 = vmatpush3.bf16.msra.mxu0 %v1317_v31 }
  0x33   : > { %1234 = vmatpush3.bf16.msra.mxu1 %v1318_v32  ;;  %1215 = vmatprep.subr.bf16.mxu0 %v1367_v1 }
  0x34   : > { %1235 = vmatprep.subr.bf16.mxu1 %v1367_v1 }
  0x36   : > { %1216 = vmatpush3.bf16.msra.mxu0 %v1319_v33 }
  0x37   : > { %1236 = vmatpush3.bf16.msra.mxu1 %v1320_v34  ;;  %1217 = vmatprep.subr.bf16.mxu0 %v1367_v1 }
  0x38   : > { %1237 = vmatprep.subr.bf16.mxu1 %v1367_v1 }
  0x3a   : > { %1218 = vmatpush3.bf16.msra.mxu0 %v1321_v35 }
  0x3b   : > { %1238 = vmatpush3.bf16.msra.mxu1 %v1322_v36  ;;  %1219 = vmatprep.subr.bf16.mxu0 %v1367_v1 }
  0x3c   : > { %1239 = vmatprep.subr.bf16.mxu1 %v1367_v1 }
  0x3e   : > { %1220 = vmatpush3.bf16.msra.mxu0 %v1323_v37 }
  0x3f   : > { %1240 = vmatpush3.bf16.msra.mxu1 %v1324_v38  ;;  %1221 = vmatprep.subr.bf16.mxu0 %v1367_v1 }
  0x40   : > { %1241 = vmatprep.subr.bf16.mxu1 %v1367_v1 }
  0x42   : > { %1222 = vmatpush3.bf16.msra.mxu0 %v1325_v39 }
  0x43   : > { %1242 = vmatpush3.bf16.msra.mxu1 %v1326_v40  ;;  %1223 = vmatprep.subr.bf16.mxu0 %v1367_v1 }
  0x44   : > { %1243 = vmatprep.subr.bf16.mxu1 %v1367_v1 }
  0x46   : > { %1224 = vmatpush3.bf16.msra.mxu0 %v1327_v42 }
  0x47   : > { %1244 = vmatpush3.bf16.msra.mxu1 %v1328_v43  ;;  %1225 = vmatprep.subr.bf16.mxu0 %v1367_v1 }
  0x48   : > { %1245 = vmatprep.subr.bf16.mxu1 %v1367_v1 }
  0x4a   : > { %1226 = vmatpush3.bf16.msra.mxu0 %v1329_v48 }
  0x4b   : > { %1246 = vmatpush3.bf16.msra.mxu1 %v1330_v51  ;;  %1251 = vmatprep.subr.bf16.mxu0 %v1367_v1 }
  0x4d   : > { %1228 = vmatmul.mubr.bf16.vlgmr.msra.gmra.mxu0 %v541_v54 }
  0x4e   : > { %1252 = vmatpush3.bf16.msra.mxu0 %v1331_v55  ;;  %1248 = vmatmul.mubr.bf16.vlgmr.msra.gmra.mxu1 %v660_v56 }
  0x4f   : > { %1253 = vmatprep.subr.bf16.mxu0 %v1367_v1  ;;  %1267 = vmatprep.mubr.msk.bf16.mxu0 %vm1368_vm0, %v1367_v1 }
  0x52   : > { %1254 = vmatpush3.bf16.msra.mxu0 %v1332_v57 }
  0x53   : > { %1255 = vmatprep.subr.bf16.mxu0 %v1367_v1 }
  0x56   : > { %1256 = vmatpush3.bf16.msra.mxu0 %v1333_v58 }
  0x57   : > { %1257 = vmatprep.subr.bf16.mxu0 %v1367_v1 }
  0x5a   : > { %1258 = vmatpush3.bf16.msra.mxu0 %v1334_v59 }
  0x5b   : > { %1259 = vmatprep.subr.bf16.mxu0 %v1367_v1 }
  0x5e   : > { %1260 = vmatpush3.bf16.msra.mxu0 %v1335_v60 }
  0x5f   : > { %1261 = vmatprep.subr.bf16.mxu0 %v1367_v1 }
  0x62   : > { %1262 = vmatpush3.bf16.msra.mxu0 %v1336_v61 }
  0x63   : > { %1263 = vmatprep.subr.bf16.mxu0 %v1367_v1 }
  0x66   : > { %1264 = vmatpush3.bf16.msra.mxu0 %v1337_v62 }
  0x67   : > { %1265 = vmatprep.subr.bf16.mxu0 %v1367_v1 }
  0x6a   : > { %1266 = vmatpush3.bf16.msra.mxu0 %v1338_v63 }
  0x6d   : > { %1268 = vmatmul.mubr.bf16.vlgmr.msra.gmra.mxu0 %v1512_v30 }
  0xed   : > { %v425_v0 = vpop.f32.mrf.mxu0 }
  0xee   : > { %v514_v2 = vpop.f32.mrf.mxu1 }
  0xef   : > { %v1189_v3 = vpop.f32.mrf.mxu0  ;;  %v515_v1 = vadd.f32 %v514_v2, %v425_v0 }
  0xf0   : > { %v1209_v4 = vpop.f32.mrf.mxu1 }
  0xf1   : > { %v428_v5 = vpop.f32.mrf.mxu0 }
  0xf2   : > { %v517_v6 = vpop.f32.mrf.mxu1 }
  0xf3   : > { %v1190_v7 = vpop.f32.mrf.mxu0  ;;  %v518_v18 = vadd.f32 %v517_v6, %v428_v5 }
  0xf4   : > { %v1210_v8 = vpop.f32.mrf.mxu1 }
 0x10d   : > { %v625_v9 = vpop.f32.mrf.mxu0 }
 0x10e   : > { %v744_v10 = vpop.f32.mrf.mxu1  ;;  %v632_v17 = vadd.f32 %v625_v9, %v515_v1 }
 0x10f   : > { %v1229_v11 = vpop.f32.mrf.mxu0 }
 0x110   : > { %v1249_v12 = vpop.f32.mrf.mxu1  ;;  %v751_v19 = vadd.f32 %v744_v10, %v632_v17 }
 0x111   : > { %v628_v13 = vpop.f32.mrf.mxu0 }
 0x112   : > { %v747_v14 = vpop.f32.mrf.mxu1  ;;  %v633_v20 = vadd.f32 %v628_v13, %v518_v18 }
 0x113   : > { %v1230_v15 = vpop.f32.mrf.mxu0 }
 0x114   : > { %v1250_v16 = vpop.f32.mrf.mxu1  ;;  %v752_v25 = vadd.f32 %v747_v14, %v633_v20 }
 0x12d   : > { %v857_v21 = vpop.f32.mrf.mxu0 }
 0x12e   : > { %v864_v22 = vadd.f32 %v857_v21, %v751_v19 }
 0x12f   : > { %v1269_v24 = vpop.f32.mrf.mxu0 }
 0x130   : > { %v873_v26 = vadd.f32 %v1109_v23, %v864_v22 }
 0x131   : > { %v860_v27 = vpop.f32.mrf.mxu0 }
 0x132   : > { %v865_v28 = vadd.f32 %v860_v27, %v752_v25  ;;  %1339 = vtanh.f32 %v873_v26 }
 0x133   : > { %v1270_v29 = vpop.f32.mrf.mxu0 }
 0x134   : > { %v874_v30 = vadd.f32 %v1109_v23, %v865_v28 }
 0x136   : > { %1341 = vtanh.f32 %v874_v30 }
 0x13f   : > { %v1340_v31 = vpop.eup %1339 }
 0x143   : > { %v1342_v32 = vpop.eup %1341 }
 0x144   : > { %v1123_v33 = vpack.c.bf16 %v1342_v32, %v1340_v31 }
 0x146   : > { %1124 = vst [vmem:[%s278_s24] sm:$0xff] %v1123_v33  }
 0x147 PF: > { %s14_s17 = sadd.s32 1, %s1365_s17   ;;  %s1640_s15 = smov %s1361_s16 }
 0x148   : > { %p11_p5 = scmp.ge.s32.totalorder %s14_s17, 4   ;;  %s1641_s16 = smov %s1643_s18 }
 0x14a   :  { %13 = sbr.rel (!%p11_p5) target bundleno = 2 (0x2), region = 73 }

// kernel: forward.7
= control target key start
LH: loop header
LB: loop body
LE: loop exit
PB: predicated region body
PF: predicated region fallthrough
CT: control target
= control target key end

     0   :  { %s1975_s21 = smov 0   ;;  %s1977_s22 = smov 0   ;;  %s2333_s0 = inlined_call_operand.vmem [shape: bf16[2,32,128], index: 0, kind: input, shape index: {}, may-alias: {0,1}]   ;;  %s2334_s1 = inlined_call_operand.vmem [shape: bf16[2,32,128], index: 1, kind: input, shape index: {}, may-alias: {0,1}]   ;;  %s2335_s2 = inlined_call_operand.vmem [shape: bf16[7,128,128], index: 2, kind: input, shape index: {}]   ;;  %s2336_s3 = inlined_call_operand.vmem [shape: f32[1,128], index: 3, kind: input, shape index: {}]   ;;  %s2337_s4 = inlined_call_operand.vmem [shape: bf16[128,128], index: 4, kind: input, shape index: {}]   ;;  %s2338_s5 = inlined_call_operand.vmem [shape: f32[1,128], index: 5, kind: input, shape index: {}]   ;;  %s2339_s6 = inlined_call_operand.vmem [shape: bf16[2,16,128], index: 6, kind: output, shape index: {}]  }
   0x1   :  { %s1979_s23 = smov 0  }
   0x2 LB: > { %s28_s24 = sadd.s32 1, %s1932_s22  ;;  %p1395_p0 = scmp.ge.s32.totalorder %s1936_s23, 1  ;;  %s1936_s23 = sphi %s1979_s23, %s16_s23   ;;  %s1932_s22 = sphi %s1977_s22, %s2341_s22   ;;  %s1928_s21 = sphi %s1975_s21, %s2340_s21  }
   0x3   : > { %p30_p1 = scmp.ge.s32.totalorder %s28_s24, 2  ;;  %p254_p2 = scmp.lt.s32.totalorder %s1936_s23, 3 }
   0x5   : > { %s2343_s24 = smov (%p30_p1, %s28_s24), 0  ;;  %p255_p3 = pnand %p1395_p0, %p254_p2 }
   0x6   : > { %p303_p4 = scmp.lt.s32.totalorder (!%p255_p3), %s1928_s21, 1 }
   0x7   : > { %258 = sbr.rel (%p255_p3) target bundleno = 574 (0x23e), region = 44 }
   0xc   : > { %v1840_v0 = vld [vmem:[%s2335_s2 + $0x78] sm:$0xff]   ;;  %v1938_v1 = vmov 0.0   ;;  %v1842_v3 = vld [vmem:[%s2335_s2 + $0x70] sm:$0xff]   ;;  %vm1939_vm0 = vmmov 0   ;;  %s2345_s21 = smov (!%p303_p4, %s1928_s21), 1  ;;  %v1844_v5 = vld [vmem:[%s2335_s2 + $0x68] sm:$0xff]  }
   0xd   : > { %1654 = vmatprep.subr.bf16.mxu0 %v1938_v1  ;;  %1674 = vmatprep.subr.bf16.mxu1 %v1938_v1  ;;  %v1841_v2 = vld [vmem:[%s2335_s2 + $0x38] sm:$0xff]   ;;  %v1843_v4 = vld [vmem:[%s2335_s2 + $0x30] sm:$0xff]   ;;  %v1845_v6 = vld [vmem:[%s2335_s2 + $0x28] sm:$0xff]   ;;  %s1570_s13 = sshll.u32 %s2345_s21, 4  ;;  %vm383_vm1 = vsmask.f32 7424 }
   0xe   : > { %1655 = vmatpush3.bf16.msra.mxu0 %v1840_v0  ;;  %1670 = vmatprep.mubr.msk.bf16.mxu0 %vm1939_vm0, %v1938_v1  ;;  %v1846_v7 = vld [vmem:[%s2335_s2 + $0x60] sm:$0xff]   ;;  %s1572_s18 = sadd.s32 8, %s1570_s13  ;;  %v1848_v9 = vld [vmem:[%s2335_s2 + $0x58] sm:$0xff]   ;;  %s310_s27 = scalar_lea.vmem %s2333_s0, %s1570_s13  ;;  %v1850_v13 = vld [vmem:[%s2335_s2 + $0x50] sm:$0xff]   ;;  %vm824_vm2 = vcmask 1045504   ;;  %vm1054_vm3 = vcmask 1044480  }
   0xf   : > { %1675 = vmatpush3.bf16.msra.mxu1 %v1841_v2  ;;  %1656 = vmatprep.subr.bf16.mxu0 %v1938_v1  ;;  %v1847_v8 = vld [vmem:[%s2335_s2 + $0x20] sm:$0xff]   ;;  %s321_s30 = scalar_lea.vmem %s2334_s1, %s1572_s18  ;;  %v1849_v10 = vld [vmem:[%s2335_s2 + $0x18] sm:$0xff]   ;;  %v1851_v14 = vld [vmem:[%s2335_s2 + $0x10] sm:$0xff]   ;;  %vm592_vm4 = vcmask 1046528   ;;  %vm937_vm5 = vsmask.f32 5376 }
  0x10   : > { %1676 = vmatprep.subr.bf16.mxu1 %v1938_v1  ;;  %1690 = vmatprep.mubr.msk.bf16.mxu1 %vm1939_vm0, %v1938_v1  ;;  %v2046_v11 = vld [vmem:[%s310_s27] sm:$0xff]   ;;  %v1852_v16 = vld [vmem:[%s2335_s2 + $0x48] sm:$0xff]   ;;  %v1858_v26 = vld [vmem:[%s2335_s2 + $0xb8] sm:$0xff]   ;;  %vm705_vm6 = vsmask.f32 6400  ;;  %s1573_s25 = sshll.u32 %s2345_s21, 3 }
  0x11   : > { %v2048_v12 = vld [vmem:[%s321_s30] sm:$0xff]   ;;  %v2058_v15 = vshll.u32 %v2046_v11, 16  ;;  %v2065_v17 = vshrl.u32 %v2046_v11, 16  ;;  %v1853_v20 = vld [vmem:[%s2335_s2 + $0x8] sm:$0xff]   ;;  %v825_v27 = vrot.slane %v2046_v11, 2  ;;  %v1859_v28 = vld [vmem:[%s2335_s2 + $0xf8] sm:$0xff]   ;;  %s332_s28 = scalar_lea.vmem %s2339_s6, %s1573_s25 }
  0x12   : > { %1657 = vmatpush3.bf16.msra.mxu0 %v1842_v3  ;;  %v2069_v19 = vshll.u32 %v2048_v12, 16  ;;  %v1854_v21 = vld [vmem:[%s2335_s2 + $0x40] sm:$0xff]   ;;  %v826_v29 = vrot.slane %v2048_v12, 2  ;;  %v1860_v33 = vld [vmem:[%s2335_s2 + $0xb0] sm:$0xff]   ;;  %v1862_v36 = vld [vmem:[%s2335_s2 + $0xa8] sm:$0xff]   ;;  %v1055_v37 = vrot.slane %v2046_v11, 3 }
  0x13   : > { %1677 = vmatpush3.bf16.msra.mxu1 %v1843_v4  ;;  %1658 = vmatprep.subr.bf16.mxu0 %v1938_v1  ;;  %v389_v18 = vrot.slane %v2058_v15, 1  ;;  %v1855_v22 = vld [vmem:[%s2335_s2] sm:$0xff]   ;;  %v938_v30 = vrot.slane %v2065_v17, 2  ;;  %v939_v32 = vrot.slane %v2058_v15, 3  ;;  %v1861_v34 = vld [vmem:[%s2335_s2 + $0xf0] sm:$0xff]   ;;  %v1863_v38 = vld [vmem:[%s2335_s2 + $0xe8] sm:$0xff]  }
  0x14   : > { %1678 = vmatprep.subr.bf16.mxu1 %v1938_v1  ;;  %v394_v24 = vrot.slane %v2069_v19, 1  ;;  %v2097_v31 = vsel %vm824_vm2, %v825_v27, %v826_v29  ;;  %v1056_v39 = vrot.slane %v2048_v12, 3  ;;  %v1864_v41 = vld [vmem:[%s2335_s2 + $0xa0] sm:$0xff]   ;;  %v709_v42 = vshrl.u32 %v2048_v12, 16  ;;  %v1866_v46 = vld [vmem:[%s2335_s2 + $0x98] sm:$0xff]   ;;  %v1868_v49 = vld [vmem:[%s2335_s2 + $0x90] sm:$0xff]  }
  0x15   : > { %v390_v23 = vor.u32 %v389_v18, %v2065_v17  ;;  %v940_v35 = vor.u32 %v939_v32, %v938_v30  ;;  %v1865_v43 = vld [vmem:[%s2335_s2 + $0xe0] sm:$0xff]   ;;  %v942_v45 = vrot.slane %v2069_v19, 3  ;;  %v1867_v47 = vld [vmem:[%s2335_s2 + $0xd8] sm:$0xff]   ;;  %v1869_v50 = vld [vmem:[%s2335_s2 + $0xd0] sm:$0xff]   ;;  %v706_v52 = vrot.slane %v2065_v17, 1 }
  0x16   : > { %1659 = vmatpush3.bf16.msra.mxu0 %v1844_v5  ;;  %v2123_v40 = vsel %vm1054_vm3, %v1055_v37, %v1056_v39  ;;  %v941_v44 = vrot.slane %v709_v42, 2  ;;  %v707_v53 = vrot.slane %v2058_v15, 2  ;;  %v1870_v54 = vld [vmem:[%s2335_s2 + $0x88] sm:$0xff]   ;;  %v712_v55 = vrot.slane %v2069_v19, 2  ;;  %v1872_v58 = vld [vmem:[%s2335_s2 + $0x80] sm:$0xff]   ;;  %v1874_v0 = vld [vmem:[%s2335_s2 + $0x138] sm:$0xff]  }
  0x17   : > { %1679 = vmatpush3.bf16.msra.mxu1 %v1845_v6  ;;  %1660 = vmatprep.subr.bf16.mxu0 %v1938_v1  ;;  %v395_v25 = vsel %vm383_vm1, %v390_v23, %v394_v24  ;;  %v1871_v56 = vld [vmem:[%s2335_s2 + $0xc8] sm:$0xff]   ;;  %v711_v57 = vrot.slane %v709_v42, 1  ;;  %v593_v59 = vrot.slane %v2046_v11, 1  ;;  %v1873_v60 = vld [vmem:[%s2335_s2 + $0xc0] sm:$0xff]   ;;  %v594_v61 = vrot.slane %v2048_v12, 1  ;;  %v1875_v4 = vld [vmem:[%s2335_s2 + $0x178] sm:$0xff]  }
  0x18   : > { %1680 = vmatprep.subr.bf16.mxu1 %v1938_v1  ;;  %v943_v48 = vor.u32 %v942_v45, %v941_v44  ;;  %v708_v62 = vor.u32 %v707_v53, %v706_v52  ;;  %v1876_v5 = vld [vmem:[%s2335_s2 + $0x130] sm:$0xff]   ;;  %v1883_v12 = vld [vmem:[%s2335_s2 + $0x158] sm:$0xff]   ;;  %v1886_v15 = vld [vmem:[%s2335_s2 + $0x108] sm:$0xff]  }
  0x19   : > { %v713_v63 = vor.u32 %v712_v55, %v711_v57  ;;  %v595_v2 = vsel %vm592_vm4, %v593_v59, %v594_v61  ;;  %v1877_v6 = vld [vmem:[%s2335_s2 + $0x170] sm:$0xff]   ;;  %v1888_v17 = vld [vmem:[%s2335_s2 + $0x100] sm:$0xff]   ;;  %v1890_v19 = vld [vmem:[%s2335_s2 + $0x1b8] sm:$0xff]  }
  0x1a   : > { %1661 = vmatpush3.bf16.msra.mxu0 %v1846_v7  ;;  %v2151_v51 = vsel %vm937_vm5, %v940_v35, %v943_v48  ;;  %v1878_v7 = vld [vmem:[%s2335_s2 + $0x128] sm:$0xff]   ;;  %v1889_v18 = vld [vmem:[%s2335_s2 + $0x140] sm:$0xff]   ;;  %v1894_v23 = vld [vmem:[%s2335_s2 + $0x198] sm:$0xff]  }
  0x1b   : > { %1681 = vmatpush3.bf16.msra.mxu1 %v1847_v8  ;;  %1662 = vmatprep.subr.bf16.mxu0 %v1938_v1  ;;  %v714_v3 = vsel %vm705_vm6, %v708_v62, %v713_v63  ;;  %v1879_v8 = vld [vmem:[%s2335_s2 + $0x168] sm:$0xff]   ;;  %v1895_v24 = vld [vmem:[%s2335_s2 + $0x190] sm:$0xff]   ;;  %v1898_v27 = vld [vmem:[%s2337_s4 + $0x38] sm:$0xff]  }
  0x1c   : > { %1682 = vmatprep.subr.bf16.mxu1 %v1938_v1  ;;  %v1900_v29 = vld [vmem:[%s2337_s4 + $0x28] sm:$0xff]   ;;  %v1901_v30 = vld [vmem:[%s2337_s4 + $0x20] sm:$0xff]   ;;  %v1903_v32 = vld [vmem:[%s2337_s4 + $0x10] sm:$0xff]  }
  0x1e   : > { %1663 = vmatpush3.bf16.msra.mxu0 %v1848_v9  ;;  %v1880_v9 = vld [vmem:[%s2335_s2 + $0x120] sm:$0xff]  }
  0x1f   : > { %1683 = vmatpush3.bf16.msra.mxu1 %v1849_v10  ;;  %1664 = vmatprep.subr.bf16.mxu0 %v1938_v1  ;;  %v1881_v10 = vld [vmem:[%s2335_s2 + $0x160] sm:$0xff]  }
  0x20   : > { %1684 = vmatprep.subr.bf16.mxu1 %v1938_v1 }
  0x22   : > { %1665 = vmatpush3.bf16.msra.mxu0 %v1850_v13  ;;  %v1884_v13 = vld [vmem:[%s2335_s2 + $0x110] sm:$0xff]  }
  0x23   : > { %1685 = vmatpush3.bf16.msra.mxu1 %v1851_v14  ;;  %1666 = vmatprep.subr.bf16.mxu0 %v1938_v1  ;;  %v1885_v14 = vld [vmem:[%s2335_s2 + $0x150] sm:$0xff]  }
  0x24   : > { %1686 = vmatprep.subr.bf16.mxu1 %v1938_v1 }
  0x26   : > { %1667 = vmatpush3.bf16.msra.mxu0 %v1852_v16  ;;  %v1887_v16 = vld [vmem:[%s2335_s2 + $0x148] sm:$0xff]  }
  0x27   : > { %1687 = vmatpush3.bf16.msra.mxu1 %v1853_v20  ;;  %1668 = vmatprep.subr.bf16.mxu0 %v1938_v1  ;;  %v1891_v20 = vld [vmem:[%s2335_s2 + $0x1b0] sm:$0xff]  }
  0x28   : > { %1688 = vmatprep.subr.bf16.mxu1 %v1938_v1 }
  0x2a   : > { %1669 = vmatpush3.bf16.msra.mxu0 %v1854_v21  ;;  %v1892_v21 = vld [vmem:[%s2335_s2 + $0x1a8] sm:$0xff]  }
  0x2b   : > { %1689 = vmatpush3.bf16.msra.mxu1 %v1855_v22  ;;  %1694 = vmatprep.subr.bf16.mxu0 %v1938_v1  ;;  %v1893_v22 = vld [vmem:[%s2335_s2 + $0x1a0] sm:$0xff]  }
  0x2c   : > { %1714 = vmatprep.subr.bf16.mxu1 %v1938_v1 }
  0x2d   : > { %1671 = vmatmul.mubr.bf16.vlgmr.msra.gmra.mxu0 %v395_v25  ;;  %v1896_v25 = vld [vmem:[%s2335_s2 + $0x188] sm:$0xff]  }
  0x2e   : > { %1691 = vmatmul.mubr.bf16.vlgmr.msra.gmra.mxu1 %v2046_v11  ;;  %1695 = vmatpush3.bf16.msra.mxu0 %v1858_v26  ;;  %v1882_v11 = vld [vmem:[%s2335_s2 + $0x118] sm:$0xff]   ;;  %v1897_v26 = vld [vmem:[%s2335_s2 + $0x180] sm:$0xff]  }
  0x2f   : > { %1715 = vmatpush3.bf16.msra.mxu1 %v1859_v28  ;;  %1696 = vmatprep.subr.bf16.mxu0 %v1938_v1  ;;  %v1899_v28 = vld [vmem:[%s2337_s4 + $0x30] sm:$0xff]  }
  0x30   : > { %1716 = vmatprep.subr.bf16.mxu1 %v1938_v1  ;;  %1710 = vmatprep.mubr.msk.bf16.mxu0 %vm1939_vm0, %v1938_v1 }
  0x31   : > { %1730 = vmatprep.mubr.msk.bf16.mxu1 %vm1939_vm0, %v1938_v1 }
  0x32   : > { %1697 = vmatpush3.bf16.msra.mxu0 %v1860_v33  ;;  %v1904_v33 = vld [vmem:[%s2337_s4 + $0x8] sm:$0xff]  }
  0x33   : > { %1717 = vmatpush3.bf16.msra.mxu1 %v1861_v34  ;;  %1698 = vmatprep.subr.bf16.mxu0 %v1938_v1  ;;  %v1905_v34 = vld [vmem:[%s2337_s4] sm:$0xff]  }
  0x34   : > { %1718 = vmatprep.subr.bf16.mxu1 %v1938_v1 }
  0x36   : > { %1699 = vmatpush3.bf16.msra.mxu0 %v1862_v36 }
  0x37   : > { %1719 = vmatpush3.bf16.msra.mxu1 %v1863_v38  ;;  %1700 = vmatprep.subr.bf16.mxu0 %v1938_v1 }
  0x38   : > { %1720 = vmatprep.subr.bf16.mxu1 %v1938_v1 }
  0x3a   : > { %1701 = vmatpush3.bf16.msra.mxu0 %v1864_v41 }
  0x3b   : > { %1721 = vmatpush3.bf16.msra.mxu1 %v1865_v43  ;;  %1702 = vmatprep.subr.bf16.mxu0 %v1938_v1 }
  0x3c   : > { %1722 = vmatprep.subr.bf16.mxu1 %v1938_v1 }
  0x3e   : > { %1703 = vmatpush3.bf16.msra.mxu0 %v1866_v46 }
  0x3f   : > { %1723 = vmatpush3.bf16.msra.mxu1 %v1867_v47  ;;  %1704 = vmatprep.subr.bf16.mxu0 %v1938_v1 }
  0x40   : > { %1724 = vmatprep.subr.bf16.mxu1 %v1938_v1 }
  0x42   : > { %1705 = vmatpush3.bf16.msra.mxu0 %v1868_v49 }
  0x43   : > { %1725 = vmatpush3.bf16.msra.mxu1 %v1869_v50  ;;  %1706 = vmatprep.subr.bf16.mxu0 %v1938_v1 }
  0x44   : > { %1726 = vmatprep.subr.bf16.mxu1 %v1938_v1 }
  0x46   : > { %1707 = vmatpush3.bf16.msra.mxu0 %v1870_v54 }
  0x47   : > { %1727 = vmatpush3.bf16.msra.mxu1 %v1871_v56  ;;  %1708 = vmatprep.subr.bf16.mxu0 %v1938_v1 }
  0x48   : > { %1728 = vmatprep.subr.bf16.mxu1 %v1938_v1 }
  0x4a   : > { %1709 = vmatpush3.bf16.msra.mxu0 %v1872_v58 }
  0x4b   : > { %1729 = vmatpush3.bf16.msra.mxu1 %v1873_v60  ;;  %1734 = vmatprep.subr.bf16.mxu0 %v1938_v1 }
  0x4c   : > { %1754 = vmatprep.subr.bf16.mxu1 %v1938_v1 }
  0x4d   : > { %1711 = vmatmul.mubr.bf16.vlgmr.msra.gmra.mxu0 %v595_v2 }
  0x4e   : > { %1735 = vmatpush3.bf16.msra.mxu0 %v1874_v0  ;;  %1731 = vmatmul.mubr.bf16.vlgmr.msra.gmra.mxu1 %v714_v3 }
  0x4f   : > { %1755 = vmatpush3.bf16.msra.mxu1 %v1875_v4  ;;  %1736 = vmatprep.subr.bf16.mxu0 %v1938_v1 }
  0x50   : > { %1756 = vmatprep.subr.bf16.mxu1 %v1938_v1  ;;  %1750 = vmatprep.mubr.msk.bf16.mxu0 %vm1939_vm0, %v1938_v1 }
  0x51   : > { %1770 = vmatprep.mubr.msk.bf16.mxu1 %vm1939_vm0, %v1938_v1 }
  0x52   : > { %1737 = vmatpush3.bf16.msra.mxu0 %v1876_v5 }
  0x53   : > { %1757 = vmatpush3.bf16.msra.mxu1 %v1877_v6  ;;  %1738 = vmatprep.subr.bf16.mxu0 %v1938_v1  ;;  %v1556_v6 = vld [vmem:[%s2336_s3] ss:$0 sm:$0xff] }
  0x54   : > { %1758 = vmatprep.subr.bf16.mxu1 %v1938_v1 }
  0x56   : > { %1739 = vmatpush3.bf16.msra.mxu0 %v1878_v7 }
  0x57   : > { %1759 = vmatpush3.bf16.msra.mxu1 %v1879_v8  ;;  %1740 = vmatprep.subr.bf16.mxu0 %v1938_v1 }
  0x58   : > { %1760 = vmatprep.subr.bf16.mxu1 %v1938_v1 }
  0x5a   : > { %1741 = vmatpush3.bf16.msra.mxu0 %v1880_v9 }
  0x5b   : > { %1761 = vmatpush3.bf16.msra.mxu1 %v1881_v10  ;;  %1742 = vmatprep.subr.bf16.mxu0 %v1938_v1 }
  0x5c   : > { %1762 = vmatprep.subr.bf16.mxu1 %v1938_v1 }
  0x5e   : > { %1743 = vmatpush3.bf16.msra.mxu0 %v1882_v11 }
  0x5f   : > { %1763 = vmatpush3.bf16.msra.mxu1 %v1883_v12  ;;  %1744 = vmatprep.subr.bf16.mxu0 %v1938_v1 }
  0x60   : > { %1764 = vmatprep.subr.bf16.mxu1 %v1938_v1 }
  0x62   : > { %1745 = vmatpush3.bf16.msra.mxu0 %v1884_v13 }
  0x63   : > { %1765 = vmatpush3.bf16.msra.mxu1 %v1885_v14  ;;  %1746 = vmatprep.subr.bf16.mxu0 %v1938_v1 }
  0x64   : > { %1766 = vmatprep.subr.bf16.mxu1 %v1938_v1 }
  0x66   : > { %1747 = vmatpush3.bf16.msra.mxu0 %v1886_v15 }
  0x67   : > { %1767 = vmatpush3.bf16.msra.mxu1 %v1887_v16  ;;  %1748 = vmatprep.subr.bf16.mxu0 %v1938_v1 }
  0x68   : > { %1768 = vmatprep.subr.bf16.mxu1 %v1938_v1 }
  0x6a   : > { %1749 = vmatpush3.bf16.msra.mxu0 %v1888_v17  ;;  %v1557_v17 = vld [vmem:[%s2338_s5] ss:$0 sm:$0xff] }
  0x6b   : > { %1769 = vmatpush3.bf16.msra.mxu1 %v1889_v18  ;;  %1774 = vmatprep.subr.bf16.mxu0 %v1938_v1 }
  0x6c   : > { %1794 = vmatprep.subr.bf16.mxu1 %v1938_v1 }
  0x6d   : > { %1751 = vmatmul.mubr.bf16.vlgmr.msra.gmra.mxu0 %v2097_v31  ;;  %v1902_v31 = vld [vmem:[%s2337_s4 + $0x18] sm:$0xff]  }
  0x6e   : > { %1775 = vmatpush3.bf16.msra.mxu0 %v1890_v19  ;;  %1771 = vmatmul.mubr.bf16.vlgmr.msra.gmra.mxu1 %v2151_v51 }
  0x6f   : > { %1776 = vmatprep.subr.bf16.mxu0 %v1938_v1  ;;  %1790 = vmatprep.mubr.msk.bf16.mxu0 %vm1939_vm0, %v1938_v1 }
  0x70   : > { %1810 = vmatprep.mubr.msk.bf16.mxu1 %vm1939_vm0, %v1938_v1  ;;  %1795 = vmatpush3.bf16.msra.mxu1 %v1898_v27 }
  0x71   : > { %1796 = vmatprep.subr.bf16.mxu1 %v1938_v1 }
  0x72   : > { %1777 = vmatpush3.bf16.msra.mxu0 %v1891_v20 }
  0x73   : > { %1778 = vmatprep.subr.bf16.mxu0 %v1938_v1 }
  0x74   : > { %1797 = vmatpush3.bf16.msra.mxu1 %v1899_v28 }
  0x75   : > { %1798 = vmatprep.subr.bf16.mxu1 %v1938_v1 }
  0x76   : > { %1779 = vmatpush3.bf16.msra.mxu0 %v1892_v21 }
  0x77   : > { %1780 = vmatprep.subr.bf16.mxu0 %v1938_v1 }
  0x78   : > { %1799 = vmatpush3.bf16.msra.mxu1 %v1900_v29 }
  0x79   : > { %1800 = vmatprep.subr.bf16.mxu1 %v1938_v1 }
  0x7a   : > { %1781 = vmatpush3.bf16.msra.mxu0 %v1893_v22 }
  0x7b   : > { %1782 = vmatprep.subr.bf16.mxu0 %v1938_v1 }
  0x7c   : > { %1801 = vmatpush3.bf16.msra.mxu1 %v1901_v30 }
  0x7d   : > { %1802 = vmatprep.subr.bf16.mxu1 %v1938_v1 }
  0x7e   : > { %1783 = vmatpush3.bf16.msra.mxu0 %v1894_v23 }
  0x7f   : > { %1784 = vmatprep.subr.bf16.mxu0 %v1938_v1 }
  0x80   : > { %1803 = vmatpush3.bf16.msra.mxu1 %v1902_v31 }
  0x81   : > { %1804 = vmatprep.subr.bf16.mxu1 %v1938_v1 }
  0x82   : > { %1785 = vmatpush3.bf16.msra.mxu0 %v1895_v24 }
  0x83   : > { %1786 = vmatprep.subr.bf16.mxu0 %v1938_v1 }
  0x84   : > { %1805 = vmatpush3.bf16.msra.mxu1 %v1903_v32 }
  0x85   : > { %1806 = vmatprep.subr.bf16.mxu1 %v1938_v1 }
  0x86   : > { %1787 = vmatpush3.bf16.msra.mxu0 %v1896_v25 }
  0x87   : > { %1788 = vmatprep.subr.bf16.mxu0 %v1938_v1 }
  0x88   : > { %1807 = vmatpush3.bf16.msra.mxu1 %v1904_v33 }
  0x89   : > { %1808 = vmatprep.subr.bf16.mxu1 %v1938_v1 }
  0x8a   : > { %1789 = vmatpush3.bf16.msra.mxu0 %v1897_v26 }
  0x8c   : > { %1809 = vmatpush3.bf16.msra.mxu1 %v1905_v34 }
  0x8d   : > { %1791 = vmatmul.mubr.bf16.vlgmr.msra.gmra.mxu0 %v2123_v40 }
  0xed   : > { %v479_v35 = vpop.f32.mrf.mxu0 }
  0xee   : > { %v568_v36 = vpop.f32.mrf.mxu1 }
  0xef   : > { %v569_v37 = vadd.f32 %v568_v36, %v479_v35  ;;  %v1672_v38 = vpop.f32.mrf.mxu0 }
  0xf0   : > { %v1692_v39 = vpop.f32.mrf.mxu1 }
  0xf1   : > { %v482_v40 = vpop.f32.mrf.mxu0 }
  0xf2   : > { %v571_v41 = vpop.f32.mrf.mxu1 }
  0xf3   : > { %v572_v42 = vadd.f32 %v571_v41, %v482_v40  ;;  %v1673_v43 = vpop.f32.mrf.mxu0 }
  0xf4   : > { %v1693_v44 = vpop.f32.mrf.mxu1 }
 0x10d   : > { %v679_v45 = vpop.f32.mrf.mxu0 }
 0x10e   : > { %v798_v46 = vpop.f32.mrf.mxu1  ;;  %v686_v60 = vadd.f32 %v679_v45, %v569_v37 }
 0x10f   : > { %v1712_v47 = vpop.f32.mrf.mxu0 }
 0x110   : > { %v1732_v48 = vpop.f32.mrf.mxu1  ;;  %v805_v61 = vadd.f32 %v798_v46, %v686_v60 }
 0x111   : > { %v682_v49 = vpop.f32.mrf.mxu0 }
 0x112   : > { %v801_v50 = vpop.f32.mrf.mxu1  ;;  %v687_v62 = vadd.f32 %v682_v49, %v572_v42 }
 0x113   : > { %v1713_v51 = vpop.f32.mrf.mxu0 }
 0x114   : > { %v1733_v52 = vpop.f32.mrf.mxu1  ;;  %v806_v0 = vadd.f32 %v801_v50, %v687_v62 }
 0x12d   : > { %v911_v1 = vpop.f32.mrf.mxu0 }
 0x12e   : > { %v1028_v53 = vpop.f32.mrf.mxu1  ;;  %v918_v63 = vadd.f32 %v911_v1, %v805_v61 }
 0x12f   : > { %v1752_v54 = vpop.f32.mrf.mxu0 }
 0x130   : > { %v1772_v55 = vpop.f32.mrf.mxu1  ;;  %v1035_v2 = vadd.f32 %v1028_v53, %v918_v63 }
 0x131   : > { %v914_v56 = vpop.f32.mrf.mxu0 }
 0x132   : > { %v1031_v57 = vpop.f32.mrf.mxu1  ;;  %v919_v3 = vadd.f32 %v914_v56, %v806_v0 }
 0x133   : > { %v1753_v58 = vpop.f32.mrf.mxu0 }
 0x134   : > { %v1773_v59 = vpop.f32.mrf.mxu1  ;;  %v1036_v8 = vadd.f32 %v1031_v57, %v919_v3 }
 0x14d   : > { %v1141_v4 = vpop.f32.mrf.mxu0 }
 0x14e   : > { %v1148_v5 = vadd.f32 %v1141_v4, %v1035_v2 }
 0x14f   : > { %v1792_v7 = vpop.f32.mrf.mxu0 }
 0x150   : > { %v1157_v9 = vadd.f32 %v1556_v6, %v1148_v5 }
 0x151   : > { %v1144_v10 = vpop.f32.mrf.mxu0 }
 0x152   : > { %v1149_v11 = vadd.f32 %v1144_v10, %v1036_v8  ;;  %1906 = vtanh.f32 %v1157_v9 }
 0x153   : > { %v1793_v12 = vpop.f32.mrf.mxu0 }
 0x154   : > { %v1158_v13 = vadd.f32 %v1556_v6, %v1149_v11 }
 0x156   : > { %1908 = vtanh.f32 %v1158_v13 }
 0x15f   : > { %v1907_v14 = vpop.eup %1906 }
 0x163   : > { %v1909_v15 = vpop.eup %1908 }
 0x164   : > { %v1161_v16 = vpack.c.bf16 %v1909_v15, %v1907_v14 }
 0x166   : > { %1811 = vmatmul.mubr.bf16.vlgmr.msra.gmra.mxu1 %v1161_v16 }
 0x226   : > { %v1267_v18 = vpop.f32.mrf.mxu1 }
 0x227   : > { %v1268_v19 = vadd.f32 %v1557_v17, %v1267_v18 }
 0x228   : > { %v1812_v20 = vpop.f32.mrf.mxu1 }
 0x229   : > { %1910 = vtanh.f32 %v1268_v19 }
 0x22a   : > { %v1270_v21 = vpop.f32.mrf.mxu1 }
 0x22b   : > { %v1271_v22 = vadd.f32 %v1557_v17, %v1270_v21 }
 0x22c   : > { %v1813_v23 = vpop.f32.mrf.mxu1 }
 0x22d   : > { %1912 = vtanh.f32 %v1271_v22 }
 0x236   : > { %v1911_v24 = vpop.eup %1910 }
 0x23a   : > { %v1913_v25 = vpop.eup %1912 }
 0x23b   : > { %v1579_v26 = vpack.c.bf16 %v1913_v25, %v1911_v24 }
 0x23d   : > { %1580 = vst [vmem:[%s332_s28] sm:$0xff] %v1579_v26  }
 0x23e PF: > { %s16_s23 = sadd.s32 1, %s1936_s23   ;;  %s2340_s21 = smov %s1932_s22 }
 0x23f   : > { %p13_p5 = scmp.ge.s32.totalorder %s16_s23, 4   ;;  %s2341_s22 = smov %s2343_s24 }
 0x241   :  { %15 = sbr.rel (!%p13_p5) target bundleno = 2 (0x2), region = 83 }

</bundles_post_ra>
